<compile_context>
chip_gen: v6e
topology: v6e:2x2x1
jax: 0.10.0
libtpu: 0.0.40
codegen_flags: <defaults>
</compile_context>

<pallas_src>
import jax
import jax.numpy as jnp
from jax.experimental import pallas as pl
from jax.experimental.pallas import tpu as pltpu

BATCH = 2
SEQ = 8
HIDDEN = 128          # multiple of 128 -> lane-dense activations & output
FFN = 512
VOCAB = 128
BS = BATCH * SEQ

EPS_POOL = 1e-6       # MeanPooling eps
EPS_L2 = 1e-12        # F.normalize eps
EPS_LN = 1e-12        # LayerNorm eps


# ---------------------------------------------------------------------------
# Single fused kernel: embedding -> encoder layer -> mean pool -> L2 normalize
# ---------------------------------------------------------------------------
def fused_transformer_embs_kernel(ids_ref, mask_ref, wemb_ref, pos_ref,
                                  wqkv_ref, wo_ref, w1_ref, w2_ref,
                                  small_ref, out_ref):
    f32 = jnp.float32
    bf16 = jnp.bfloat16

    # Packed small params: one (8, FFN) f32 tile, lane-tile-aligned slices.
    b_qkv = small_ref[0:1, 0:3 * HIDDEN]      # [1, 3H]
    b_o   = small_ref[1:2, 0:HIDDEN]          # [1, H]
    g1    = small_ref[2:3, 0:HIDDEN]
    be1   = small_ref[3:4, 0:HIDDEN]
    b_f1  = small_ref[4:5, :]                 # [1, FFN]
    b_f2  = small_ref[5:6, 0:HIDDEN]
    g2    = small_ref[6:7, 0:HIDDEN]
    be2   = small_ref[7:8, 0:HIDDEN]

    def layer_norm(t, g, b):
        mu = jnp.mean(t, axis=-1, keepdims=True)
        var = jnp.mean((t - mu) * (t - mu), axis=-1, keepdims=True)
        return (t - mu) * jax.lax.rsqrt(var + EPS_LN) * g + b

    def matmul(a, w_bf16):
        # bf16 MXU matmul, f32 accumulate.
        return jnp.dot(a.astype(bf16), w_bf16, preferred_element_type=f32)

    # --- embedding lookup fused as a one-hot matmul (gather inside kernel) ---
    ids = ids_ref[...]                                                # [BS, 1] i32
    iota = jax.lax.broadcasted_iota(jnp.int32, (BS, VOCAB), 1)
    one_hot = (iota == ids).astype(bf16)                              # [BS, V]
    x = jnp.dot(one_hot, wemb_ref[...], preferred_element_type=f32)   # [BS, H]
    x = x + pos_ref[...]                                              # f32 residual

    # --- fused QKV projection, flattened 2-D [BS, H] @ [H, 3H] ---
    qkv = matmul(x, wqkv_ref[...]) + b_qkv                            # [BS, 3H]
    q = qkv[:, 0:HIDDEN].reshape(BATCH, SEQ, HIDDEN)
    k = qkv[:, HIDDEN:2 * HIDDEN].reshape(BATCH, SEQ, HIDDEN)
    v = qkv[:, 2 * HIDDEN:3 * HIDDEN].reshape(BATCH, SEQ, HIDDEN)

    # --- single-head self-attention (scores kept 3-D [B, S, S], f32 math) ---
    mask = mask_ref[...]                                              # [B, S]
    neg_mask = (1.0 - mask) * (-1e9)                                  # hoisted once
    scale = 1.0 / (float(HIDDEN) ** 0.5)
    scores = jnp.einsum('bqd,bkd->bqk', q.astype(bf16), k.astype(bf16),
                        preferred_element_type=f32) * scale
    scores = scores + neg_mask[:, None, :]
    scores = scores - jnp.max(scores, axis=-1, keepdims=True)
    p = jnp.exp(scores)
    p = p * pl.reciprocal(jnp.sum(p, axis=-1, keepdims=True), approx=True)
    ctx = jnp.einsum('bqk,bkd->bqd', p.astype(bf16), v.astype(bf16),
                     preferred_element_type=f32)
    ctx = ctx.reshape(BS, HIDDEN)

    attn_out = matmul(ctx, wo_ref[...]) + b_o
    x = layer_norm(x + attn_out, g1, be1)

    # --- feed-forward ---
    # TODO(synk): tanh-approx GELU; pretrained BERT uses exact erf GELU.
    h = matmul(x, w1_ref[...]) + b_f1                                 # [BS, FFN]
    h = 0.5 * h * (1.0 + jnp.tanh(0.7978845608028654 *
                                  (h + 0.044715 * h * h * h)))
    ffn_out = matmul(h, w2_ref[...]) + b_f2                           # [BS, H]
    hidden = layer_norm(x + ffn_out, g2, be2)                         # [BS, H]

    # --- MeanPooling + F.normalize(p=2, dim=1), fused in the same kernel ---
    h3 = hidden.reshape(BATCH, SEQ, HIDDEN)                           # free reshape
    m3 = mask[:, :, None]                                             # [B, S, 1]
    sum_emb = jnp.sum(h3 * m3, axis=1)                                # [B, H]
    sum_mask = jnp.maximum(jnp.sum(m3, axis=1), EPS_POOL)             # [B, 1]
    mean_emb = sum_emb * pl.reciprocal(sum_mask, approx=True)         # [B, H]

    sumsq = jnp.sum(mean_emb * mean_emb, axis=1, keepdims=True)       # [B, 1]
    inv_norm = jax.lax.rsqrt(jnp.maximum(sumsq, EPS_L2 * EPS_L2))
    out_ref[...] = mean_emb * inv_norm                                # [B, H] f32


# ---------------------------------------------------------------------------
# Wrapper (single pallas_call, everything full-resident in VMEM, no grid)
# ---------------------------------------------------------------------------
_VMEM = pl.BlockSpec(memory_space=pltpu.MemorySpace.VMEM)


def transformer_embs_pallas(input_ids, attention_mask, params):
    args = (input_ids.reshape(BS, 1), attention_mask) + tuple(params)
    return pl.pallas_call(
        fused_transformer_embs_kernel,
        out_shape=jax.ShapeDtypeStruct((BATCH, HIDDEN), jnp.float32),
        in_specs=[_VMEM] * len(args),
        out_specs=_VMEM,
    )(*args)


def init_params(key):
    ks = jax.random.split(key, 6)

    def w(k, shape):
        return (jax.random.normal(k, shape, jnp.float32) * 0.02).astype(jnp.bfloat16)

    word_emb = w(ks[0], (VOCAB, HIDDEN))                       # bf16
    pos_emb = jax.random.normal(ks[1], (SEQ, HIDDEN), jnp.float32) * 0.02
    pos_tiled = jnp.tile(pos_emb, (BATCH, 1))                  # [BS, H] f32 constant

    w_qkv = w(ks[2], (HIDDEN, 3 * HIDDEN))                     # fused QKV weight
    w_o = w(ks[3], (HIDDEN, HIDDEN))
    w_1 = w(ks[4], (HIDDEN, FFN))
    w_2 = w(ks[5], (FFN, HIDDEN))

    # Packed small params, one (8, FFN) f32 tile:
    # rows: 0 b_qkv | 1 b_o | 2 ln1_g | 3 ln1_b | 4 b_f1 | 5 b_f2 | 6 ln2_g | 7 ln2_b
    small = jnp.zeros((8, FFN), jnp.float32)
    ones_h = jnp.ones((HIDDEN,), jnp.float32)
    small = small.at[2, 0:HIDDEN].set(ones_h)                  # LN1 gamma
    small = small.at[6, 0:HIDDEN].set(ones_h)                  # LN2 gamma

    return (word_emb, pos_tiled, w_qkv, w_o, w_1, w_2, small)


@jax.jit
def transformer_embs_forward(input_ids, attention_mask, params):
    embs = transformer_embs_pallas(input_ids, attention_mask, params)
    # torch .squeeze(0): only squeezes if the batch dim is 1
    if embs.shape[0] == 1:
        embs = embs[0]
    return embs


if __name__ == "__main__":
    key = jax.random.PRNGKey(0)
    pkey, ikey = jax.random.split(key)

    params = init_params(pkey)

    input_ids = jax.random.randint(ikey, (BATCH, SEQ), 0, VOCAB, dtype=jnp.int32)
    lengths = jnp.array([SEQ, SEQ // 2], dtype=jnp.int32)
    attention_mask = (jnp.arange(SEQ)[None, :] < lengths[:, None]).astype(jnp.float32)

    embs = transformer_embs_forward(input_ids, attention_mask, params)
    embs = jax.block_until_ready(embs)

    assert embs.shape == (BATCH, HIDDEN), embs.shape
    # sanity: rows are L2-normalized
    norms = jnp.linalg.norm(embs, axis=1)
    assert bool(jnp.all(jnp.abs(norms - 1.0) < 1e-3)), norms
    print("KERNEL_OK")
</pallas_src>

<mosaic_0001>
module attributes {stable_mosaic.version = 11 : i64} {
  func.func @fused_transformer_embs_kernel(%arg0: memref<16x1xi32, #tpu.memory_space<vmem>>, %arg1: memref<2x8xf32, #tpu.memory_space<vmem>>, %arg2: memref<128x128xbf16, #tpu.memory_space<vmem>>, %arg3: memref<16x128xf32, #tpu.memory_space<vmem>>, %arg4: memref<128x384xbf16, #tpu.memory_space<vmem>>, %arg5: memref<128x128xbf16, #tpu.memory_space<vmem>>, %arg6: memref<128x512xbf16, #tpu.memory_space<vmem>>, %arg7: memref<512x128xbf16, #tpu.memory_space<vmem>>, %arg8: memref<8x512xf32, #tpu.memory_space<vmem>>, %arg9: memref<2x128xf32, #tpu.memory_space<vmem>>) attributes {dimension_semantics = [], scalar_prefetch = 0 : i64, scratch_operands = 0 : i64, tpu.core_type = #tpu.core_type<tc>} {
    %c0 = arith.constant 0 : index
    %c0_0 = arith.constant 0 : index
    %0 = vector.load %arg8[%c0, %c0_0] : memref<8x512xf32, #tpu.memory_space<vmem>>, vector<1x384xf32>
    %c1 = arith.constant 1 : index
    %c0_1 = arith.constant 0 : index
    %1 = vector.load %arg8[%c1, %c0_1] : memref<8x512xf32, #tpu.memory_space<vmem>>, vector<1x128xf32>
    %c2 = arith.constant 2 : index
    %c0_2 = arith.constant 0 : index
    %2 = vector.load %arg8[%c2, %c0_2] : memref<8x512xf32, #tpu.memory_space<vmem>>, vector<1x128xf32>
    %c3 = arith.constant 3 : index
    %c0_3 = arith.constant 0 : index
    %3 = vector.load %arg8[%c3, %c0_3] : memref<8x512xf32, #tpu.memory_space<vmem>>, vector<1x128xf32>
    %c4 = arith.constant 4 : index
    %c0_4 = arith.constant 0 : index
    %4 = vector.load %arg8[%c4, %c0_4] : memref<8x512xf32, #tpu.memory_space<vmem>>, vector<1x512xf32>
    %c5 = arith.constant 5 : index
    %c0_5 = arith.constant 0 : index
    %5 = vector.load %arg8[%c5, %c0_5] : memref<8x512xf32, #tpu.memory_space<vmem>>, vector<1x128xf32>
    %c6 = arith.constant 6 : index
    %c0_6 = arith.constant 0 : index
    %6 = vector.load %arg8[%c6, %c0_6] : memref<8x512xf32, #tpu.memory_space<vmem>>, vector<1x128xf32>
    %c7 = arith.constant 7 : index
    %c0_7 = arith.constant 0 : index
    %7 = vector.load %arg8[%c7, %c0_7] : memref<8x512xf32, #tpu.memory_space<vmem>>, vector<1x128xf32>
    %c0_8 = arith.constant 0 : index
    %c0_9 = arith.constant 0 : index
    %8 = vector.load %arg0[%c0_8, %c0_9] : memref<16x1xi32, #tpu.memory_space<vmem>>, vector<16x1xi32>
    %9 = tpu.iota {dimensions = array<i32: 1>} : vector<16x128xi32>
    %10 = vector.broadcast %8 : vector<16x1xi32> to vector<16x128xi32>
    %11 = arith.cmpi eq, %9, %10 : vector<16x128xi32>
    %12 = arith.extui %11 : vector<16x128xi1> to vector<16x128xi32>
    %13 = arith.sitofp %12 : vector<16x128xi32> to vector<16x128xf32>
    %14 = arith.truncf %13 : vector<16x128xf32> to vector<16x128xbf16>
    %c0_10 = arith.constant 0 : index
    %c0_11 = arith.constant 0 : index
    %15 = vector.load %arg2[%c0_10, %c0_11] : memref<128x128xbf16, #tpu.memory_space<vmem>>, vector<128x128xbf16>
    %cst = arith.constant dense<0.000000e+00> : vector<16x128xf32>
    %16 = tpu.matmul %14, %15, %cst {dimension_numbers = #tpu.dot_dimension_numbers<[1], [0], [0], [1], [0, 0, 1, 1], [], []>} : vector<16x128xbf16>, vector<128x128xbf16>, vector<16x128xf32> -> vector<16x128xf32>
    %c0_12 = arith.constant 0 : index
    %c0_13 = arith.constant 0 : index
    %17 = vector.load %arg3[%c0_12, %c0_13] : memref<16x128xf32, #tpu.memory_space<vmem>>, vector<16x128xf32>
    %18 = arith.addf %16, %17 : vector<16x128xf32>
    %c0_14 = arith.constant 0 : index
    %c0_15 = arith.constant 0 : index
    %19 = vector.load %arg4[%c0_14, %c0_15] : memref<128x384xbf16, #tpu.memory_space<vmem>>, vector<128x384xbf16>
    %20 = arith.truncf %18 : vector<16x128xf32> to vector<16x128xbf16>
    %cst_16 = arith.constant dense<0.000000e+00> : vector<16x384xf32>
    %21 = tpu.matmul %20, %19, %cst_16 {dimension_numbers = #tpu.dot_dimension_numbers<[1], [0], [0], [1], [0, 0, 1, 1], [], []>} : vector<16x128xbf16>, vector<128x384xbf16>, vector<16x384xf32> -> vector<16x384xf32>
    %22 = vector.broadcast %0 : vector<1x384xf32> to vector<16x384xf32>
    %23 = arith.addf %21, %22 : vector<16x384xf32>
    %24 = vector.extract_strided_slice %23 {offsets = [0, 0], sizes = [16, 128], strides = [1, 1]} : vector<16x384xf32> to vector<16x128xf32>
    %25 = vector.shape_cast %24 : vector<16x128xf32> to vector<2x8x128xf32>
    %26 = vector.extract_strided_slice %23 {offsets = [0, 128], sizes = [16, 128], strides = [1, 1]} : vector<16x384xf32> to vector<16x128xf32>
    %27 = vector.shape_cast %26 : vector<16x128xf32> to vector<2x8x128xf32>
    %28 = vector.extract_strided_slice %23 {offsets = [0, 256], sizes = [16, 128], strides = [1, 1]} : vector<16x384xf32> to vector<16x128xf32>
    %29 = vector.shape_cast %28 : vector<16x128xf32> to vector<2x8x128xf32>
    %c0_17 = arith.constant 0 : index
    %c0_18 = arith.constant 0 : index
    %30 = vector.load %arg1[%c0_17, %c0_18] : memref<2x8xf32, #tpu.memory_space<vmem>>, vector<2x8xf32>
    %cst_19 = arith.constant 1.000000e+00 : f32
    %31 = vector.broadcast %cst_19 : f32 to vector<2x8xf32>
    %32 = arith.subf %31, %30 : vector<2x8xf32>
    %cst_20 = arith.constant -1.000000e+09 : f32
    %33 = vector.broadcast %cst_20 : f32 to vector<2x8xf32>
    %34 = arith.mulf %32, %33 : vector<2x8xf32>
    %35 = arith.truncf %25 : vector<2x8x128xf32> to vector<2x8x128xbf16>
    %36 = arith.truncf %27 : vector<2x8x128xf32> to vector<2x8x128xbf16>
    "tpu.trace_start"() <{level = 10 : i32, message = "bqd,bkd->bqk"}> : () -> ()
    %cst_21 = arith.constant dense<0.000000e+00> : vector<2x8x8xf32>
    %37 = tpu.matmul %35, %36, %cst_21 {dimension_numbers = #tpu.dot_dimension_numbers<[2], [2], [1], [1], [0, 0, 0, 1, 1, 1], [0], [0]>} : vector<2x8x128xbf16>, vector<2x8x128xbf16>, vector<2x8x8xf32> -> vector<2x8x8xf32>
    "tpu.trace_stop"() : () -> ()
    %cst_22 = arith.constant 0.0883883461 : f32
    %38 = vector.broadcast %cst_22 : f32 to vector<2x8x8xf32>
    %39 = arith.mulf %37, %38 : vector<2x8x8xf32>
    %40 = vector.shape_cast %34 : vector<2x8xf32> to vector<2x1x8xf32>
    %41 = vector.broadcast %40 : vector<2x1x8xf32> to vector<2x8x8xf32>
    %42 = arith.addf %39, %41 : vector<2x8x8xf32>
    %cst_23 = arith.constant dense<0xFF800000> : vector<2x8xf32>
    %43 = vector.multi_reduction <maximumf>, %42, %cst_23 [2] : vector<2x8x8xf32> to vector<2x8xf32>
    %44 = vector.shape_cast %43 : vector<2x8xf32> to vector<2x8x1xf32>
    %45 = vector.broadcast %44 : vector<2x8x1xf32> to vector<2x8x8xf32>
    %46 = arith.subf %42, %45 : vector<2x8x8xf32>
    %47 = math.exp %46 : vector<2x8x8xf32>
    %cst_24 = arith.constant dense<0.000000e+00> : vector<2x8xf32>
    %48 = vector.multi_reduction <add>, %47, %cst_24 [2] : vector<2x8x8xf32> to vector<2x8xf32>
    %49 = vector.shape_cast %48 : vector<2x8xf32> to vector<2x8x1xf32>
    %50 = tpu.reciprocal %49 {approx = true} : vector<2x8x1xf32> -> vector<2x8x1xf32>
    %51 = vector.broadcast %50 : vector<2x8x1xf32> to vector<2x8x8xf32>
    %52 = arith.mulf %47, %51 : vector<2x8x8xf32>
    %53 = arith.truncf %52 : vector<2x8x8xf32> to vector<2x8x8xbf16>
    %54 = arith.truncf %29 : vector<2x8x128xf32> to vector<2x8x128xbf16>
    "tpu.trace_start"() <{level = 10 : i32, message = "bqk,bkd->bqd"}> : () -> ()
    %cst_25 = arith.constant dense<0.000000e+00> : vector<2x8x128xf32>
    %55 = tpu.matmul %53, %54, %cst_25 {dimension_numbers = #tpu.dot_dimension_numbers<[2], [1], [1], [2], [0, 0, 0, 1, 1, 2], [0], [0]>} : vector<2x8x8xbf16>, vector<2x8x128xbf16>, vector<2x8x128xf32> -> vector<2x8x128xf32>
    "tpu.trace_stop"() : () -> ()
    %56 = vector.shape_cast %55 : vector<2x8x128xf32> to vector<16x128xf32>
    %c0_26 = arith.constant 0 : index
    %c0_27 = arith.constant 0 : index
    %57 = vector.load %arg5[%c0_26, %c0_27] : memref<128x128xbf16, #tpu.memory_space<vmem>>, vector<128x128xbf16>
    %58 = arith.truncf %56 : vector<16x128xf32> to vector<16x128xbf16>
    %cst_28 = arith.constant dense<0.000000e+00> : vector<16x128xf32>
    %59 = tpu.matmul %58, %57, %cst_28 {dimension_numbers = #tpu.dot_dimension_numbers<[1], [0], [0], [1], [0, 0, 1, 1], [], []>} : vector<16x128xbf16>, vector<128x128xbf16>, vector<16x128xf32> -> vector<16x128xf32>
    %60 = vector.broadcast %1 : vector<1x128xf32> to vector<16x128xf32>
    %61 = arith.addf %59, %60 : vector<16x128xf32>
    %62 = arith.addf %18, %61 : vector<16x128xf32>
    %cst_29 = arith.constant dense<0.000000e+00> : vector<16xf32>
    %63 = vector.multi_reduction <add>, %62, %cst_29 [1] : vector<16x128xf32> to vector<16xf32>
    %64 = vector.shape_cast %63 : vector<16xf32> to vector<16x1xf32>
    %cst_30 = arith.constant 1.280000e+02 : f32
    %65 = vector.broadcast %cst_30 : f32 to vector<16x1xf32>
    %66 = arith.divf %64, %65 : vector<16x1xf32>
    %67 = vector.broadcast %66 : vector<16x1xf32> to vector<16x128xf32>
    %68 = arith.subf %62, %67 : vector<16x128xf32>
    %69 = vector.broadcast %66 : vector<16x1xf32> to vector<16x128xf32>
    %70 = arith.subf %62, %69 : vector<16x128xf32>
    %71 = arith.mulf %68, %70 : vector<16x128xf32>
    %cst_31 = arith.constant dense<0.000000e+00> : vector<16xf32>
    %72 = vector.multi_reduction <add>, %71, %cst_31 [1] : vector<16x128xf32> to vector<16xf32>
    %73 = vector.shape_cast %72 : vector<16xf32> to vector<16x1xf32>
    %cst_32 = arith.constant 1.280000e+02 : f32
    %74 = vector.broadcast %cst_32 : f32 to vector<16x1xf32>
    %75 = arith.divf %73, %74 : vector<16x1xf32>
    %76 = vector.broadcast %66 : vector<16x1xf32> to vector<16x128xf32>
    %77 = arith.subf %62, %76 : vector<16x128xf32>
    %cst_33 = arith.constant 9.99999996E-13 : f32
    %78 = vector.broadcast %cst_33 : f32 to vector<16x1xf32>
    %79 = arith.addf %75, %78 : vector<16x1xf32>
    %80 = math.rsqrt %79 : vector<16x1xf32>
    %81 = vector.broadcast %80 : vector<16x1xf32> to vector<16x128xf32>
    %82 = arith.mulf %77, %81 : vector<16x128xf32>
    %83 = vector.broadcast %2 : vector<1x128xf32> to vector<16x128xf32>
    %84 = arith.mulf %82, %83 : vector<16x128xf32>
    %85 = vector.broadcast %3 : vector<1x128xf32> to vector<16x128xf32>
    %86 = arith.addf %84, %85 : vector<16x128xf32>
    %c0_34 = arith.constant 0 : index
    %c0_35 = arith.constant 0 : index
    %87 = vector.load %arg6[%c0_34, %c0_35] : memref<128x512xbf16, #tpu.memory_space<vmem>>, vector<128x512xbf16>
    %88 = arith.truncf %86 : vector<16x128xf32> to vector<16x128xbf16>
    %cst_36 = arith.constant dense<0.000000e+00> : vector<16x512xf32>
    %89 = tpu.matmul %88, %87, %cst_36 {dimension_numbers = #tpu.dot_dimension_numbers<[1], [0], [0], [1], [0, 0, 1, 1], [], []>} : vector<16x128xbf16>, vector<128x512xbf16>, vector<16x512xf32> -> vector<16x512xf32>
    %90 = vector.broadcast %4 : vector<1x512xf32> to vector<16x512xf32>
    %91 = arith.addf %89, %90 : vector<16x512xf32>
    %cst_37 = arith.constant 5.000000e-01 : f32
    %92 = vector.broadcast %cst_37 : f32 to vector<16x512xf32>
    %93 = arith.mulf %92, %91 : vector<16x512xf32>
    %cst_38 = arith.constant 4.471500e-02 : f32
    %94 = vector.broadcast %cst_38 : f32 to vector<16x512xf32>
    %95 = arith.mulf %94, %91 : vector<16x512xf32>
    %96 = arith.mulf %95, %91 : vector<16x512xf32>
    %97 = arith.mulf %96, %91 : vector<16x512xf32>
    %98 = arith.addf %91, %97 : vector<16x512xf32>
    %cst_39 = arith.constant 0.797884583 : f32
    %99 = vector.broadcast %cst_39 : f32 to vector<16x512xf32>
    %100 = arith.mulf %99, %98 : vector<16x512xf32>
    %101 = math.tanh %100 : vector<16x512xf32>
    %cst_40 = arith.constant 1.000000e+00 : f32
    %102 = vector.broadcast %cst_40 : f32 to vector<16x512xf32>
    %103 = arith.addf %102, %101 : vector<16x512xf32>
    %104 = arith.mulf %93, %103 : vector<16x512xf32>
    %c0_41 = arith.constant 0 : index
    %c0_42 = arith.constant 0 : index
    %105 = vector.load %arg7[%c0_41, %c0_42] : memref<512x128xbf16, #tpu.memory_space<vmem>>, vector<512x128xbf16>
    %106 = arith.truncf %104 : vector<16x512xf32> to vector<16x512xbf16>
    %cst_43 = arith.constant dense<0.000000e+00> : vector<16x128xf32>
    %107 = tpu.matmul %106, %105, %cst_43 {dimension_numbers = #tpu.dot_dimension_numbers<[1], [0], [0], [1], [0, 0, 1, 1], [], []>} : vector<16x512xbf16>, vector<512x128xbf16>, vector<16x128xf32> -> vector<16x128xf32>
    %108 = vector.broadcast %5 : vector<1x128xf32> to vector<16x128xf32>
    %109 = arith.addf %107, %108 : vector<16x128xf32>
    %110 = arith.addf %86, %109 : vector<16x128xf32>
    %cst_44 = arith.constant dense<0.000000e+00> : vector<16xf32>
    %111 = vector.multi_reduction <add>, %110, %cst_44 [1] : vector<16x128xf32> to vector<16xf32>
    %112 = vector.shape_cast %111 : vector<16xf32> to vector<16x1xf32>
    %cst_45 = arith.constant 1.280000e+02 : f32
    %113 = vector.broadcast %cst_45 : f32 to vector<16x1xf32>
    %114 = arith.divf %112, %113 : vector<16x1xf32>
    %115 = vector.broadcast %114 : vector<16x1xf32> to vector<16x128xf32>
    %116 = arith.subf %110, %115 : vector<16x128xf32>
    %117 = vector.broadcast %114 : vector<16x1xf32> to vector<16x128xf32>
    %118 = arith.subf %110, %117 : vector<16x128xf32>
    %119 = arith.mulf %116, %118 : vector<16x128xf32>
    %cst_46 = arith.constant dense<0.000000e+00> : vector<16xf32>
    %120 = vector.multi_reduction <add>, %119, %cst_46 [1] : vector<16x128xf32> to vector<16xf32>
    %121 = vector.shape_cast %120 : vector<16xf32> to vector<16x1xf32>
    %cst_47 = arith.constant 1.280000e+02 : f32
    %122 = vector.broadcast %cst_47 : f32 to vector<16x1xf32>
    %123 = arith.divf %121, %122 : vector<16x1xf32>
    %124 = vector.broadcast %114 : vector<16x1xf32> to vector<16x128xf32>
    %125 = arith.subf %110, %124 : vector<16x128xf32>
    %cst_48 = arith.constant 9.99999996E-13 : f32
    %126 = vector.broadcast %cst_48 : f32 to vector<16x1xf32>
    %127 = arith.addf %123, %126 : vector<16x1xf32>
    %128 = math.rsqrt %127 : vector<16x1xf32>
    %129 = vector.broadcast %128 : vector<16x1xf32> to vector<16x128xf32>
    %130 = arith.mulf %125, %129 : vector<16x128xf32>
    %131 = vector.broadcast %6 : vector<1x128xf32> to vector<16x128xf32>
    %132 = arith.mulf %130, %131 : vector<16x128xf32>
    %133 = vector.broadcast %7 : vector<1x128xf32> to vector<16x128xf32>
    %134 = arith.addf %132, %133 : vector<16x128xf32>
    %135 = vector.shape_cast %134 : vector<16x128xf32> to vector<2x8x128xf32>
    %136 = vector.shape_cast %30 : vector<2x8xf32> to vector<2x8x1xf32>
    %137 = vector.broadcast %136 : vector<2x8x1xf32> to vector<2x8x128xf32>
    %138 = arith.mulf %135, %137 : vector<2x8x128xf32>
    %cst_49 = arith.constant dense<0.000000e+00> : vector<2x128xf32>
    %139 = vector.multi_reduction <add>, %138, %cst_49 [1] : vector<2x8x128xf32> to vector<2x128xf32>
    %cst_50 = arith.constant dense<0.000000e+00> : vector<2x1xf32>
    %140 = vector.multi_reduction <add>, %136, %cst_50 [1] : vector<2x8x1xf32> to vector<2x1xf32>
    %cst_51 = arith.constant 9.99999997E-7 : f32
    %141 = vector.broadcast %cst_51 : f32 to vector<2x1xf32>
    %142 = arith.maximumf %140, %141 : vector<2x1xf32>
    %143 = tpu.reciprocal %142 {approx = true} : vector<2x1xf32> -> vector<2x1xf32>
    %144 = vector.broadcast %143 : vector<2x1xf32> to vector<2x128xf32>
    %145 = arith.mulf %139, %144 : vector<2x128xf32>
    %146 = arith.mulf %145, %145 : vector<2x128xf32>
    %cst_52 = arith.constant dense<0.000000e+00> : vector<2xf32>
    %147 = vector.multi_reduction <add>, %146, %cst_52 [1] : vector<2x128xf32> to vector<2xf32>
    %148 = vector.shape_cast %147 : vector<2xf32> to vector<2x1xf32>
    %cst_53 = arith.constant 1.000000e-24 : f32
    %149 = vector.broadcast %cst_53 : f32 to vector<2x1xf32>
    %150 = arith.maximumf %148, %149 : vector<2x1xf32>
    %151 = math.rsqrt %150 : vector<2x1xf32>
    %152 = vector.broadcast %151 : vector<2x1xf32> to vector<2x128xf32>
    %153 = arith.mulf %145, %152 : vector<2x128xf32>
    %c0_54 = arith.constant 0 : index
    %c0_55 = arith.constant 0 : index
    %154 = vector.load %arg9[%c0_54, %c0_55] : memref<2x128xf32, #tpu.memory_space<vmem>>, vector<2x128xf32>
    tpu.vector_store %arg9[%c0_54, %c0_55], %153 {strides = array<i32>} : memref<2x128xf32, #tpu.memory_space<vmem>>, vector<2x128xf32>,
    return
  }
}

</mosaic_0001>

<bundles_post_ra>
// kernel: transformer_embs_forward.1
= control target key start
LH: loop header
LB: loop body
LE: loop exit
PB: predicated region body
PF: predicated region fallthrough
CT: control target
= control target key end

     0   :  { %14 = vsyncpa [#allocation3], 0  ;;  %s2636_s0 = inlined_call_operand.vmem [shape: s32[16,1], index: 0, kind: input, shape index: {}]   ;;  %s2637_s1 = inlined_call_operand.hbm [shape: f32[2,8], index: 1, kind: input, shape index: {}]   ;;  %s2638_s2 = inlined_call_operand.hbm [shape: bf16[128,128], index: 2, kind: input, shape index: {}]   ;;  %s2639_s3 = inlined_call_operand.hbm [shape: f32[16,128], index: 3, kind: input, shape index: {}]   ;;  %s2640_s4 = inlined_call_operand.hbm [shape: bf16[128,384], index: 4, kind: input, shape index: {}]   ;;  %s2641_s5 = inlined_call_operand.hbm [shape: bf16[128,128], index: 5, kind: input, shape index: {}]   ;;  %s2642_s6 = inlined_call_operand.hbm [shape: bf16[128,512], index: 6, kind: input, shape index: {}]   ;;  %s2643_s7 = inlined_call_operand.hbm [shape: bf16[512,128], index: 7, kind: input, shape index: {}]   ;;  %s2644_s8 = inlined_call_operand.vmem [shape: f32[8,512], index: 8, kind: input, shape index: {}]   ;;  %s2645_s9 = inlined_call_operand.hbm [shape: f32[2,128], index: 9, kind: output, shape index: {}]  }
   0x1   :  { %15 = vsyncpa [#allocation6], 0 }
   0x2   :  { %16 = vsyncpa [#allocation9], 0 }
   0x3   :  { %17 = vsyncpa [#allocation12], 0 }
   0x4   :  { %18 = vsyncpa [#allocation4], 0  ;;  %s2363_s30 = smov [#allocation5]  }
   0x5   :  { %s36_s10 = sshll.u32 %s2363_s30, 4  ;;  %s37_s10 = int_to_ptr.vmem [resolvable:$true] %s36_s10 }
   0x6   :  { %s2201_s11 = scalar_lea.vmem %s37_s10, 1024  ;;  %p2206_p1 = scmp.lt.s32.totalorder %s37_s10, %s37_s10 }
   0x7   :  { %p2202_p0 = scmp.ne.s32.totalorder %s37_s10, %s2201_s11  ;;  %p2207_p2 = scmp.lt.s32.totalorder %s2201_s11, %s2201_s11 }
   0x9   :  { %p2208_p3 = por %p2207_p2, %p2206_p1 }
   0xb   :  { %p2209_p4 = pnand %p2208_p3, %p2202_p0 }
   0xd   :  { %2212 = shalt.err (!%p2209_p4)
}
   0xe   :  { %s2364_s12 = smov 64   ;;  %s2365_s13 = smov 4  }
   0xf   :  { %42 = dma.hbm_to_vmem [thread:$0]  %s2638_s2, 1024, %s37_s10, [#allocation6], %s2364_s12, %s2364_s12, %s2365_s13  }
  0x10   :  { %s2366_s16 = smov [#allocation8]  }
  0x11   :  { %s60_s17 = sshll.u32 %s2366_s16, 4  ;;  %s61_s17 = int_to_ptr.vmem [resolvable:$true] %s60_s17 }
  0x12   :  { %s2221_s18 = scalar_lea.vmem %s61_s17, 3072  ;;  %p2226_p6 = scmp.lt.s32.totalorder %s61_s17, %s61_s17 }
  0x13   :  { %p2222_p5 = scmp.ne.s32.totalorder %s61_s17, %s2221_s18  ;;  %p2227_p7 = scmp.lt.s32.totalorder %s2221_s18, %s2221_s18 }
  0x15   :  { %p2228_p8 = por %p2227_p7, %p2226_p6 }
  0x17   :  { %p2229_p9 = pnand %p2228_p8, %p2222_p5 }
  0x19   :  { %2232 = shalt.err (!%p2229_p9)
}
  0x1a   :  { %s2367_s19 = smov 192   ;;  %s2368_s20 = smov 12  }
  0x1b   :  { %66 = dma.hbm_to_vmem [thread:$0]  %s2640_s4, 3072, %s61_s17, [#allocation9], %s2367_s19, %s2367_s19, %s2368_s20  }
  0x1c   :  { %s2369_s23 = smov [#allocation11]  }
  0x1d   :  { %s84_s24 = sshll.u32 %s2369_s23, 4  ;;  %s85_s24 = int_to_ptr.vmem [resolvable:$true] %s84_s24 }
  0x1e   :  { %s2241_s2 = scalar_lea.vmem %s85_s24, 4096  ;;  %p2246_p11 = scmp.lt.s32.totalorder %s85_s24, %s85_s24 }
  0x1f   :  { %p2242_p10 = scmp.ne.s32.totalorder %s85_s24, %s2241_s2  ;;  %p2247_p12 = scmp.lt.s32.totalorder %s2241_s2, %s2241_s2 }
  0x21   :  { %p2248_p13 = por %p2247_p12, %p2246_p11 }
  0x23   :  { %p2249_p0 = pnand %p2248_p13, %p2242_p10 }
  0x25   :  { %2252 = shalt.err (!%p2249_p0)
}
  0x26   :  { %s2370_s25 = smov 256   ;;  %s2371_s26 = smov 16  }
  0x27   :  { %90 = dma.hbm_to_vmem [thread:$0]  %s2642_s6, 4096, %s85_s24, [#allocation12], %s2370_s25, %s2370_s25, %s2371_s26  }
  0x28   :  { %s2372_s29 = smov [#allocation2]   ;;  %s2373_s4 = smov [#allocation7]  }
  0x29   :  { %s27_s30 = sshll.u32 %s2372_s29, 4  ;;  %s48_s10 = sshll.u32 %s2373_s4, 4  ;;  %s28_s30 = int_to_ptr.vmem [resolvable:$true] %s27_s30  ;;  %s49_s10 = int_to_ptr.vmem [resolvable:$true] %s48_s10 }
  0x2a   :  { %s2261_s11 = scalar_lea.vmem %s28_s30, 32  ;;  %p2266_p2 = scmp.lt.s32.totalorder %s28_s30, %s28_s30 }
  0x2b   :  { %p2262_p1 = scmp.ne.s32.totalorder %s28_s30, %s2261_s11  ;;  %p2267_p3 = scmp.lt.s32.totalorder %s2261_s11, %s2261_s11 }
  0x2d   :  { %p2268_p4 = por %p2267_p3, %p2266_p2 }
  0x2f   :  { %p2269_p5 = pnand %p2268_p4, %p2262_p1 }
  0x31   :  { %2272 = shalt.err (!%p2269_p5)
}
  0x32   :  { %30 = dma.hbm_to_vmem [thread:$0]  %s2637_s1, 32, %s28_s30, [#allocation3]  }
  0x33   :  { %s2281_s16 = scalar_lea.vmem %s49_s10, 256  ;;  %p2286_p7 = scmp.lt.s32.totalorder %s49_s10, %s49_s10 }
  0x34   :  { %p2282_p6 = scmp.ne.s32.totalorder %s49_s10, %s2281_s16  ;;  %p2287_p8 = scmp.lt.s32.totalorder %s2281_s16, %s2281_s16 }
  0x36   :  { %p2288_p9 = por %p2287_p8, %p2286_p7 }
  0x38   :  { %p2289_p10 = pnand %p2288_p9, %p2282_p6 }
  0x3a   :  { %2292 = shalt.err (!%p2289_p10)
}
  0x3b   :  { %s2374_s6 = smov 128   ;;  %s2375_s17 = smov 8  }
  0x3c   :  { %54 = dma.hbm_to_vmem [thread:$0]  %s2639_s3, 256, %s49_s10, [#allocation6], %s2374_s6, %s2374_s6, %s2375_s17  }
  0x3d   :  { %s2376_s20 = smov [#allocation10]   ;;  %s2377_s22 = smov [#allocation13]  }
  0x3e   :  { %s72_s21 = sshll.u32 %s2376_s20, 4  ;;  %s96_s23 = sshll.u32 %s2377_s22, 4  ;;  %s73_s21 = int_to_ptr.vmem [resolvable:$true] %s72_s21  ;;  %s97_s23 = int_to_ptr.vmem [resolvable:$true] %s96_s23 }
  0x3f   :  { %s2301_s1 = scalar_lea.vmem %s73_s21, 1024  ;;  %p2306_p12 = scmp.lt.s32.totalorder %s73_s21, %s73_s21 }
  0x40   :  { %p2302_p11 = scmp.ne.s32.totalorder %s73_s21, %s2301_s1  ;;  %p2307_p13 = scmp.lt.s32.totalorder %s2301_s1, %s2301_s1 }
  0x42   :  { %p2308_p0 = por %p2307_p13, %p2306_p12 }
  0x44   :  { %p2309_p1 = pnand %p2308_p0, %p2302_p11 }
  0x46   :  { %2312 = shalt.err (!%p2309_p1)
}
  0x47   :  { %78 = dma.hbm_to_vmem [thread:$0]  %s2641_s5, 1024, %s73_s21, [#allocation9], %s2364_s12, %s2364_s12, %s2365_s13  }
  0x48   :  { %s2321_s3 = scalar_lea.vmem %s97_s23, 4096  ;;  %p2326_p3 = scmp.lt.s32.totalorder %s97_s23, %s97_s23 }
  0x49   :  { %p2322_p2 = scmp.ne.s32.totalorder %s97_s23, %s2321_s3  ;;  %p2327_p4 = scmp.lt.s32.totalorder %s2321_s3, %s2321_s3 }
  0x4b   :  { %p2328_p5 = por %p2327_p4, %p2326_p3 }
  0x4d   :  { %p2329_p6 = pnand %p2328_p5, %p2322_p2 }
  0x4f   :  { %2332 = shalt.err (!%p2329_p6)
}
  0x50   :  { %102 = dma.hbm_to_vmem [thread:$0]  %s2643_s7, 4096, %s97_s23, [#allocation12], %s2364_s12, %s2364_s12, %s2365_s13  }
  0x51   :  { %2353 = dma.done.wait [#allocation3], 32  }
  0x52   :  { %2354 = vsyncadd [#allocation3], 4294967264 }
  0x53   :  { %2355 = dma.done.wait [#allocation6], 1280  }
  0x54   :  { %2356 = vsyncadd [#allocation6], 4294966016 }
  0x55   :  { %2357 = dma.done.wait [#allocation9], 4096  }
  0x56   :  { %2358 = vsyncadd [#allocation9], 4294963200 }
  0x57   :  { %2359 = dma.done.wait [#allocation12], 8192  }
  0x58   :  { %2360 = vsyncadd [#allocation12], 4294959104  ;;  %v2378_v0 = vmov 0   ;;  %v2379_v1 = vmov 0.0   ;;  %v136_v2 = vld [vmem:[%s2636_s0] sm:$0xff]  ;;  %v137_v4 = vld [vmem:[%s2636_s0 + $0x8] sm:$0xff]  ;;  %v138_v24 = vlaneseq }
  0x59   :  { %2026 = vset.pattern.permute.xlu0 %v2378_v0  ;;  %1921 = vmatprep.subr.bf16.mxu0 %v2379_v1  ;;  %v2027_v3 = vld [vmem:[#allocation5 + $0x38] sm:$0xff]   ;;  %vm2380_vm0 = vmmov 0   ;;  %v2028_v5 = vld [vmem:[#allocation5 + $0x30] sm:$0xff]   ;;  %v2029_v6 = vld [vmem:[#allocation5 + $0x28] sm:$0xff]   ;;  %v2381_v29 = vmov 1.0|1.0  }
  0x5a   :  { %469 = vmatprep.mubr.bf16.mxu1 %v2378_v0  ;;  %141 = vperm.xlu0 %2026, %v136_v2   ;;  %v2035_v7 = vld [vmem:[#allocation8 + $0xac] ss:$12 sps:$4 sm:$0xff]   ;;  %v2037_v8 = vld [vmem:[#allocation8 + $0xa8] ss:$12 sps:$4 sm:$0xff]   ;;  %v2041_v11 = vld [vmem:[#allocation8 + $0x90] ss:$12 sps:$4 sm:$0xff]  }
  0x5b   :  { %1937 = vmatprep.mubr.msk.bf16.mxu0 %vm2380_vm0, %v2379_v1  ;;  %1922 = vmatpush3.bf16.msra.mxu0 %v2027_v3  ;;  %v2030_v9 = vld [vmem:[#allocation5 + $0x20] sm:$0xff]   ;;  %v2043_v12 = vld [vmem:[#allocation8 + $0x7c] ss:$12 sps:$4 sm:$0xff]   ;;  %v2045_v14 = vld [vmem:[#allocation8 + $0x78] ss:$12 sps:$4 sm:$0xff]   ;;  %v139_v26 = vand.u32 127, %v138_v24 }
  0x5c   :  { %1923 = vmatprep.subr.bf16.mxu0 %v2379_v1  ;;  %437 = vmatprep.subr.bf16.mxu1 %v2035_v7  ;;  %v2039_v10 = vld [vmem:[#allocation8 + $0x94] ss:$12 sps:$4 sm:$0xff]   ;;  %v2031_v13 = vld [vmem:[#allocation5 + $0x18] sm:$0xff]   ;;  %v2047_v15 = vld [vmem:[#allocation8 + $0x64] ss:$12 sps:$4 sm:$0xff]   ;;  %v2504_v50 = vshrl.u32 %v138_v24, 7 }
  0x5d   :  { %438 = vmatpush1.bf16.msra.mxu1 %v2037_v8  ;;  %v2032_v16 = vld [vmem:[#allocation5 + $0x10] sm:$0xff]   ;;  %v2033_v18 = vld [vmem:[#allocation5 + $0x8] sm:$0xff]   ;;  %v2053_v20 = vld [vmem:[#allocation8 + $0x48] ss:$12 sps:$4 sm:$0xff]   ;;  %vm675_vm4 = vcmask 1043456   ;;  %vm645_vm5 = vcmask 64512  }
  0x5e   :  { %144 = vperm.xlu0 %2026, %v137_v4   ;;  %439 = vmatprep.subr.bf16.mxu1 %v2039_v10  ;;  %v2049_v17 = vld [vmem:[#allocation8 + $0x60] ss:$12 sps:$4 sm:$0xff]   ;;  %v2034_v22 = vld [vmem:[#allocation5] sm:$0xff]   ;;  %v2042_v30 = vld [vmem:[#allocation8 + $0x98] ss:$12 sps:$4 sm:$0xff]   ;;  %v2507_v51 = vsub.s32 1, %v2504_v50 }
  0x5f   :  { %1924 = vmatpush3.bf16.msra.mxu0 %v2028_v5  ;;  %v2051_v19 = vld [vmem:[#allocation8 + $0x4c] ss:$12 sps:$4 sm:$0xff]   ;;  %v2055_v21 = vld [vmem:[#allocation8 + $0x34] ss:$12 sps:$4 sm:$0xff]   ;;  %v2057_v23 = vld [vmem:[#allocation8 + $0x30] ss:$12 sps:$4 sm:$0xff]  }
  0x60   :  { %1925 = vmatprep.subr.bf16.mxu0 %v2379_v1  ;;  %v2038_v28 = vld [vmem:[#allocation8 + $0xb0] ss:$12 sps:$4 sm:$0xff]   ;;  %v2046_v31 = vld [vmem:[#allocation8 + $0x80] ss:$12 sps:$4 sm:$0xff]   ;;  %v2050_v32 = vld [vmem:[#allocation8 + $0x68] ss:$12 sps:$4 sm:$0xff]  }
  0x61   :  { %440 = vmatpush1.bf16.msra.mxu1 %v2041_v11  ;;  %v2054_v33 = vld [vmem:[#allocation8 + $0x50] ss:$12 sps:$4 sm:$0xff]   ;;  %v2058_v34 = vld [vmem:[#allocation8 + $0x38] ss:$12 sps:$4 sm:$0xff]   ;;  %v2062_v37 = vld [vmem:[#allocation8 + $0x20] ss:$12 sps:$4 sm:$0xff]  }
  0x62   :  { %441 = vmatprep.subr.bf16.mxu1 %v2043_v12  ;;  %v2059_v35 = vld [vmem:[#allocation8 + $0x1c] ss:$12 sps:$4 sm:$0xff]   ;;  %v2061_v36 = vld [vmem:[#allocation8 + $0x18] ss:$12 sps:$4 sm:$0xff]   ;;  %v2065_v39 = vld [vmem:[#allocation8] ss:$12 sps:$4 sm:$0xff]  }
  0x63   :  { %1926 = vmatpush3.bf16.msra.mxu0 %v2029_v6  ;;  %v2063_v38 = vld [vmem:[#allocation8 + $0x4] ss:$12 sps:$4 sm:$0xff]   ;;  %v2066_v40 = vld [vmem:[#allocation8 + $0x8] ss:$12 sps:$4 sm:$0xff]   ;;  %v170_v44 = vld [vmem:[#allocation7 + $0x8] sm:$0xff]  ;;  %v304_v53 = vsub.s32 2, %v2504_v50 }
  0x64   :  { %1927 = vmatprep.subr.bf16.mxu0 %v2379_v1  ;;  %v169_v42 = vld [vmem:[#allocation7] sm:$0xff]  ;;  %v2515_v55 = vsub.s32 0, %v2504_v50  ;;  %vm1692_vm6 = vcmask 1041409   ;;  %vm1695_vm7 = vcmask 1041408  }
  0x65   :  { %442 = vmatpush1.bf16.msra.mxu1 %v2045_v14  ;;  %v127_v52 = vld [vmem:[%s2644_s8] ss:$8 sm:$0x7] }
  0x66   :  { %443 = vmatprep.subr.bf16.mxu1 %v2047_v15  ;;  %v301_v54 = vrot.slane %v127_v52, %v2507_v51  ;;  %v305_v60 = vrot.slane %v127_v52, %v304_v53  ;;  %v297_v62 = vrot.slane %v127_v52, %v2515_v55 }
  0x67   :  { %1928 = vmatpush3.bf16.msra.mxu0 %v2030_v9 }
  0x68   :  { %1929 = vmatprep.subr.bf16.mxu0 %v2379_v1 }
  0x69   :  { %444 = vmatpush1.bf16.msra.mxu1 %v2049_v17 }
  0x6a   :  { %445 = vmatprep.subr.bf16.mxu1 %v2051_v19 }
  0x6b   :  { %1930 = vmatpush3.bf16.msra.mxu0 %v2031_v13 }
  0x6c   :  { %1931 = vmatprep.subr.bf16.mxu0 %v2379_v1 }
  0x6d   :  { %446 = vmatpush1.bf16.msra.mxu1 %v2053_v20  ;;  %v2529_v20 = vld [vmem:[#allocation2] sm:$0x3] }
  0x6e   :  { %447 = vmatprep.subr.bf16.mxu1 %v2055_v21  ;;  %v522_v21 = vsub.f32 1.0, %v2529_v20 }
  0x6f   :  { %1932 = vmatpush3.bf16.msra.mxu0 %v2032_v16 }
  0x70   :  { %1933 = vmatprep.subr.bf16.mxu0 %v2379_v1 }
  0x71   :  { %448 = vmatpush1.bf16.msra.mxu1 %v2057_v23  ;;  %v523_v23 = vmul.f32 -1e+09, %v522_v21 }
  0x72   :  { %449 = vmatprep.subr.bf16.mxu1 %v2059_v35 }
  0x73   :  { %1934 = vmatpush3.bf16.msra.mxu0 %v2033_v18  ;;  %v2382_v18 = vmov 1966171168  }
  0x74   :  { %1935 = vmatprep.subr.bf16.mxu0 %v2379_v1  ;;  %v612_v19 = vunpack.c.l.s4 %v2382_v18 }
  0x75   :  { %450 = vmatpush1.bf16.msra.mxu1 %v2061_v36 }
  0x76   :  { %451 = vmatprep.subr.bf16.mxu1 %v2063_v38 }
  0x77   :  { %1936 = vmatpush3.bf16.msra.mxu0 %v2034_v22  ;;  %v613_v22 = vunpack.c.0.s8 %v612_v19 }
  0x78   :  { %1941 = vmatprep.subr.bf16.mxu0 %v2379_v1 }
  0x79   :  { %452 = vmatpush1.bf16.msra.mxu1 %v2065_v39  ;;  %v616_v24 = vsub.s32 %v613_v22, %v2504_v50 }
  0x7a   :  { %1961 = vmatprep.subr.bf16.mxu1 %v2379_v1 }
  0xd5   :  { %v142_v25 = vpop.permute.xlu0 %141 }
  0xd6   :  { %vm146_vm1 = vcmp.eq.s32.totalorder %v139_v26, %v142_v25  ;;  %v617_v25 = vrot.slane %v523_v23, %v616_v24 }
  0xd9   :  { %v145_v27 = vpop.permute.xlu0 %144 }
  0xda   :  { %vm147_vm2 = vcmp.eq.s32.totalorder %v139_v26, %v145_v27  ;;  %v625_v26 = vrot.slane %v617_v25, %v616_v24 }
  0xdb   :  { %vm1742_vm3 = vmpackc.low %vm147_vm2, %vm146_vm1 }
  0xdc   :  { %1938 = vmatmul.mubr.msk.bf16.vlgmr.msra.gmra.mxu0 %vm1742_vm3, %v2381_v29  ;;  %v636_v27 = vrot.slane %v625_v26, %v2515_v55 }
  0xdd   :  { %1942 = vmatpush3.bf16.msra.mxu0 %v2038_v28  ;;  %1957 = vmatprep.mubr.msk.bf16.mxu0 %vm2380_vm0, %v2379_v1  ;;  %v618_v28 = vcombine.high %v617_v25, %v617_v25  ;;  %v128_v25 = vld [vmem:[%s2644_s8 + $0x1] ss:$0 sm:$0xff] }
  0xde   :  { %1943 = vmatprep.subr.bf16.mxu0 %v2379_v1 }
  0xe1   :  { %1944 = vmatpush3.bf16.msra.mxu0 %v2042_v30 }
  0xe2   :  { %1945 = vmatprep.subr.bf16.mxu0 %v2379_v1 }
  0xe5   :  { %1946 = vmatpush3.bf16.msra.mxu0 %v2046_v31 }
  0xe6   :  { %1947 = vmatprep.subr.bf16.mxu0 %v2379_v1 }
  0xe9   :  { %1948 = vmatpush3.bf16.msra.mxu0 %v2050_v32 }
  0xea   :  { %1949 = vmatprep.subr.bf16.mxu0 %v2379_v1 }
  0xed   :  { %1950 = vmatpush3.bf16.msra.mxu0 %v2054_v33  ;;  %v632_v33 = vrot.slane %v618_v28, %v616_v24 }
  0xee   :  { %1951 = vmatprep.subr.bf16.mxu0 %v2379_v1 }
  0xf1   :  { %1952 = vmatpush3.bf16.msra.mxu0 %v2058_v34 }
  0xf2   :  { %1953 = vmatprep.subr.bf16.mxu0 %v2379_v1 }
  0xf5   :  { %1954 = vmatpush3.bf16.msra.mxu0 %v2062_v37  ;;  %v640_v37 = vrot.slane %v632_v33, %v2515_v55  ;;  %v2075_v33 = vld [vmem:[#allocation11 + $0xe0] ss:$16 sps:$4 sm:$0xff]  }
  0xf6   :  { %1955 = vmatprep.subr.bf16.mxu0 %v2379_v1 }
  0xf9   :  { %1956 = vmatpush3.bf16.msra.mxu0 %v2066_v40 }
  0xfa   :  { %1985 = vmatprep.subr.bf16.mxu0 %v2379_v1 }
 0x19c   :  { %v253_v41 = vpop.f32.mrf.mxu0 }
 0x19d   :  { %v2494_v46 = vadd.f32 %v253_v41, %v169_v42 }
 0x19e   :  { %v1939_v43 = vpop.f32.mrf.mxu0 }
 0x1a0   :  { %v256_v45 = vpop.f32.mrf.mxu0 }
 0x1a1   :  { %v2496_v47 = vadd.f32 %v256_v45, %v170_v44 }
 0x1a2   :  { %v1940_v48 = vpop.f32.mrf.mxu0 }
 0x1a3   :  { %v292_v49 = vpack.c.bf16 %v2496_v47, %v2494_v46 }
 0x1a5   :  { %470 = vmatmul.mubr.bf16.vlgmr.msra.gmra.mxu1 %v292_v49  ;;  %1958 = vmatmul.mubr.bf16.vlgmr.msra.gmra.mxu0 %v292_v49 }
 0x1a6   :  { %1963 = vmatprep.mubr.msk.bf16.mxu1 %vm2380_vm0, %v2379_v1  ;;  %2001 = vmatprep.mubr.msk.bf16.mxu0 %vm2380_vm0, %v2379_v1 }
 0x265   :  { %v471_v56 = vpop.f32.mrf.mxu1  ;;  %v514_v57 = vpop.f32.mrf.mxu0 }
 0x266   :  { %v472_v8 = vadd.f32 %v471_v56, %v297_v62  ;;  %v515_v13 = vadd.f32 %v514_v57, %v305_v60 }
 0x267   :  { %v473_v58 = vpop.f32.mrf.mxu1  ;;  %v1959_v59 = vpop.f32.mrf.mxu0 }
 0x268   :  { %v474_v61 = vadd.f32 %v473_v58, %v301_v54  ;;  %v524_v11 = vpack.c.bf16 %v472_v8, %v472_v8  ;;  %v670_v15 = vpack.c.bf16 %v515_v13, %v515_v13  ;;  %v2072_v13 = vld [vmem:[#allocation10 + $0x10] sm:$0xff]  }
 0x269   :  { %v475_v63 = vpop.f32.mrf.mxu1  ;;  %v517_v2 = vpop.f32.mrf.mxu0 }
 0x26a   :  { %v526_v3 = vpack.c.bf16 %v474_v61, %v474_v61  ;;  %v518_v4 = vadd.f32 %v517_v2, %v305_v60  ;;  %v476_v14 = vadd.f32 %v475_v63, %v297_v62  ;;  %v677_v17 = vsel %vm675_vm4, %v670_v15, 0  ;;  %v2067_v61 = vld [vmem:[#allocation10 + $0x38] sm:$0xff]   ;;  %v2068_v62 = vld [vmem:[#allocation10 + $0x30] sm:$0xff]   ;;  %v2069_v63 = vld [vmem:[#allocation10 + $0x28] sm:$0xff]  }
 0x26b   :  { %v477_v5 = vpop.f32.mrf.mxu1  ;;  %v1960_v6 = vpop.f32.mrf.mxu0  ;;  %1986 = vmatpush3.bf16.msra.mxu0 %v2067_v61  ;;  %v2070_v2 = vld [vmem:[#allocation10 + $0x20] sm:$0xff]   ;;  %v2104_v61 = vld [vmem:[#allocation11 + $0x6c] ss:$16 sps:$4 sm:$0xff]  }
 0x26c   :  { %v671_v7 = vpack.c.bf16 %v518_v4, %v518_v4  ;;  %1962 = vmatpush3.bf16.xpose.msra.mxu1 %v526_v3  ;;  %v478_v10 = vadd.f32 %v477_v5, %v301_v54  ;;  %v525_v16 = vpack.c.bf16 %v476_v14, %v476_v14  ;;  %1987 = vmatprep.subr.bf16.mxu0 %v2379_v1  ;;  %v2071_v3 = vld [vmem:[#allocation10 + $0x18] sm:$0xff]   ;;  %v2073_v14 = vld [vmem:[#allocation10 + $0x8] sm:$0xff]   ;;  %v2074_v15 = vld [vmem:[#allocation10] sm:$0xff]  }
 0x26d   :  { %1967 = vmatprep.subr.bf16.mxu1 %v2379_v1 }
 0x26e   :  { %v2521_v9 = vsel %vm675_vm4, %v671_v7, 0  ;;  %v527_v12 = vpack.c.bf16 %v478_v10, %v478_v10 }
 0x26f   :  { %1988 = vmatpush3.bf16.msra.mxu0 %v2068_v62  ;;  %v2099_v62 = vld [vmem:[#allocation11 + $0x60] ss:$16 sps:$4 sm:$0xff]  }
 0x270   :  { %1989 = vmatprep.subr.bf16.mxu0 %v2379_v1 }
 0x273   :  { %1964 = vmatmul.mubr.bf16.vlgmr.msra.gmra.mxu1 %v524_v11  ;;  %1990 = vmatpush3.bf16.msra.mxu0 %v2069_v63  ;;  %v2102_v63 = vld [vmem:[#allocation11 + $0x68] ss:$16 sps:$4 sm:$0xff]  }
 0x274   :  { %1968 = vmatpush3.bf16.xpose.msra.mxu1 %v527_v12  ;;  %1969 = vmatprep.mubr.msk.bf16.mxu1 %vm2380_vm0, %v2379_v1 }
 0x275   :  { %1973 = vmatprep.subr.bf16.mxu1 %v2379_v1  ;;  %1991 = vmatprep.subr.bf16.mxu0 %v2379_v1 }
 0x277   :  { %1992 = vmatpush3.bf16.msra.mxu0 %v2070_v2  ;;  %v2107_v2 = vld [vmem:[#allocation11 + $0x44] ss:$16 sps:$4 sm:$0xff]  }
 0x278   :  { %1993 = vmatprep.subr.bf16.mxu0 %v2379_v1 }
 0x27b   :  { %1970 = vmatmul.mubr.bf16.vlgmr.msra.gmra.mxu1 %v525_v16  ;;  %1994 = vmatpush3.bf16.msra.mxu0 %v2071_v3  ;;  %v2110_v3 = vld [vmem:[#allocation11 + $0x4c] ss:$16 sps:$4 sm:$0xff]  }
 0x27c   :  { %1974 = vmatpush3.bf16.msra.mxu1 %v677_v17  ;;  %1975 = vmatprep.mubr.msk.bf16.mxu1 %vm2380_vm0, %v2379_v1 }
 0x27d   :  { %1979 = vmatprep.subr.bf16.mxu1 %v2379_v1  ;;  %1995 = vmatprep.subr.bf16.mxu0 %v2379_v1 }
 0x27f   :  { %1996 = vmatpush3.bf16.msra.mxu0 %v2072_v13  ;;  %v2117_v13 = vld [vmem:[#allocation11] ss:$16 sps:$4 sm:$0xff]  }
 0x280   :  { %1997 = vmatprep.subr.bf16.mxu0 %v2379_v1 }
 0x283   :  { %1998 = vmatpush3.bf16.msra.mxu0 %v2073_v14  ;;  %v2120_v14 = vld [vmem:[#allocation11 + $0x8] ss:$16 sps:$4 sm:$0xff]  }
 0x284   :  { %1999 = vmatprep.subr.bf16.mxu0 %v2379_v1 }
 0x287   :  { %2000 = vmatpush3.bf16.msra.mxu0 %v2074_v15 }
 0x333   :  { %v562_v29 = vpop.f32.mrf.mxu1 }
 0x334   :  { %v608_v30 = vmul.f32 0.088388346, %v562_v29 }
 0x335   :  { %v1965_v31 = vpop.f32.mrf.mxu1 }
 0x336   :  { %v643_v32 = vadd.f32 %v636_v27, %v608_v30 }
 0x337   :  { %v565_v34 = vpop.f32.mrf.mxu1 }
 0x338   :  { %v646_v35 = vsel %vm645_vm5, %v643_v32, -inf  ;;  %v2077_v34 = vld [vmem:[#allocation11 + $0xe4] ss:$16 sps:$4 sm:$0xff]  }
 0x339   :  { %647 = vmax.xlane.f32.xlu1 %v646_v35  ;;  %v1966_v36 = vpop.f32.mrf.mxu1  ;;  %v2080_v35 = vld [vmem:[#allocation11 + $0xec] ss:$16 sps:$4 sm:$0xff]  }
 0x33a   :  { %1157 = vmatprep.subr.bf16.mxu0 %v2080_v35  ;;  %v2128_v35 = vld [vmem:[#allocation13 + $0xf0] sm:$0xff]  }
 0x33b   :  { %v602_v38 = vpop.f32.mrf.mxu1 }
 0x33c   :  { %v609_v39 = vmul.f32 0.088388346, %v602_v38 }
 0x33d   :  { %v1971_v40 = vpop.f32.mrf.mxu1 }
 0x33e   :  { %v644_v41 = vadd.f32 %v640_v37, %v609_v39 }
 0x33f   :  { %v605_v42 = vpop.f32.mrf.mxu1 }
 0x340   :  { %v649_v43 = vsel %vm645_vm5, %v644_v41, -inf  ;;  %v2083_v42 = vld [vmem:[#allocation11 + $0xc4] ss:$16 sps:$4 sm:$0xff]  }
 0x341   :  { %650 = vmax.xlane.f32.xlu1 %v649_v43  ;;  %v1972_v44 = vpop.f32.mrf.mxu1  ;;  %v2086_v43 = vld [vmem:[#allocation11 + $0xcc] ss:$16 sps:$4 sm:$0xff]  }
 0x342   :  { %v2081_v44 = vld [vmem:[#allocation11 + $0xc0] ss:$16 sps:$4 sm:$0xff]  }
 0x3c2   :  { %v648_v45 = vpop.xlane.xlu1 %647 }
 0x3c3   :  { %v652_v48 = vsub.f32 %v643_v32, %v648_v45  ;;  %v2084_v45 = vld [vmem:[#allocation11 + $0xc8] ss:$16 sps:$4 sm:$0xff]  }
 0x3c5   :  { %v654_v49 = vmul.f32 1.442695, %v652_v48  ;;  %v2089_v48 = vld [vmem:[#allocation11 + $0xa4] ss:$16 sps:$4 sm:$0xff]  }
 0x3c7   :  { %2155 = vpow2.f32 %v654_v49  ;;  %v2092_v49 = vld [vmem:[#allocation11 + $0xac] ss:$16 sps:$4 sm:$0xff]  }
 0x3ca   :  { %v651_v52 = vpop.xlane.xlu1 %650 }
 0x3cb   :  { %v653_v54 = vsub.f32 %v644_v41, %v651_v52  ;;  %v2087_v52 = vld [vmem:[#allocation11 + $0xa0] ss:$16 sps:$4 sm:$0xff]  }
 0x3cd   :  { %v656_v56 = vmul.f32 1.442695, %v653_v54  ;;  %v2090_v54 = vld [vmem:[#allocation11 + $0xa8] ss:$16 sps:$4 sm:$0xff]  }
 0x3cf   :  { %2157 = vpow2.f32 %v656_v56  ;;  %v2093_v56 = vld [vmem:[#allocation11 + $0x80] ss:$16 sps:$4 sm:$0xff]  }
 0x3d4   :  { %v2156_v57 = vpop.eup %2155 }
 0x3d5   :  { %v658_v58 = vsel %vm645_vm5, %v2156_v57, 0.0 }
 0x3d6   :  { %659 = vadd.xlane.f32.xlu0 %v658_v58  ;;  %v2096_v58 = vld [vmem:[#allocation11 + $0x88] ss:$16 sps:$4 sm:$0xff]  }
 0x3dc   :  { %v2158_v59 = vpop.eup %2157 }
 0x3dd   :  { %v661_v60 = vsel %vm645_vm5, %v2158_v59, 0.0 }
 0x3de   :  { %662 = vadd.xlane.f32.xlu1 %v661_v60  ;;  %v2101_v60 = vld [vmem:[#allocation11 + $0x64] ss:$16 sps:$4 sm:$0xff]  }
 0x45f   :  { %v660_v4 = vpop.xlane.xlu0 %659 }
 0x460   :  { %2159 = vrcp.f32 %v660_v4  ;;  %v2105_v4 = vld [vmem:[#allocation11 + $0x40] ss:$16 sps:$4 sm:$0xff]  }
 0x467   :  { %v663_v5 = vpop.xlane.xlu1 %662 }
 0x468   :  { %2161 = vrcp.f32 %v663_v5  ;;  %v2108_v5 = vld [vmem:[#allocation11 + $0x48] ss:$16 sps:$4 sm:$0xff]  }
 0x46d   :  { %v2160_v6 = vpop.eup %2159 }
 0x46e   :  { %v666_v7 = vmul.f32 %v2160_v6, %v2156_v57  ;;  %v2095_v57 = vld [vmem:[#allocation11 + $0x84] ss:$16 sps:$4 sm:$0xff]  }
 0x46f   :  { %v2113_v6 = vld [vmem:[#allocation11 + $0x24] ss:$16 sps:$4 sm:$0xff]  }
 0x470   :  { %v668_v8 = vpack.c.bf16 %v666_v7, %v666_v7  ;;  %v2116_v7 = vld [vmem:[#allocation11 + $0x2c] ss:$16 sps:$4 sm:$0xff]  }
 0x472   :  { %1976 = vmatmul.mubr.msk.bf16.vlgmr.msra.gmra.mxu1 %vm645_vm5, %v668_v8  ;;  %v2111_v8 = vld [vmem:[#allocation11 + $0x20] ss:$16 sps:$4 sm:$0xff]  }
 0x473   :  { %1980 = vmatpush3.bf16.msra.mxu1 %v2521_v9  ;;  %1981 = vmatprep.mubr.msk.bf16.mxu1 %vm2380_vm0, %v2379_v1 }
 0x474   :  { %1114 = vmatprep.subr.bf16.mxu1 %v2077_v34  ;;  %v2126_v34 = vld [vmem:[#allocation13 + $0xb8] sm:$0xff]  }
 0x475   :  { %v2162_v10 = vpop.eup %2161 }
 0x476   :  { %v667_v11 = vmul.f32 %v2162_v10, %v2158_v59  ;;  %v2098_v59 = vld [vmem:[#allocation11 + $0x8c] ss:$16 sps:$4 sm:$0xff]   ;;  %v2114_v10 = vld [vmem:[#allocation11 + $0x28] ss:$16 sps:$4 sm:$0xff]  }
 0x478   :  { %v669_v12 = vpack.c.bf16 %v667_v11, %v667_v11  ;;  %v2119_v11 = vld [vmem:[#allocation11 + $0x4] ss:$16 sps:$4 sm:$0xff]  }
 0x47a   :  { %1982 = vmatmul.mubr.msk.bf16.vlgmr.msra.gmra.mxu1 %vm645_vm5, %v669_v12  ;;  %v2122_v12 = vld [vmem:[#allocation11 + $0xc] ss:$16 sps:$4 sm:$0xff]  }
 0x47b   :  { %1146 = vmatprep.mubr.bf16.mxu1 %v2378_v0  ;;  %1115 = vmatpush1.bf16.msra.mxu1 %v2075_v33  ;;  %v2125_v33 = vld [vmem:[#allocation13 + $0x38] sm:$0xff]  }
 0x47c   :  { %1116 = vmatprep.subr.bf16.mxu1 %v2083_v42  ;;  %v2137_v42 = vld [vmem:[#allocation13 + $0x20] sm:$0xff]  }
 0x47f   :  { %1117 = vmatpush1.bf16.msra.mxu1 %v2081_v44  ;;  %v2139_v44 = vld [vmem:[#allocation13 + $0x58] sm:$0xff]  }
 0x480   :  { %1118 = vmatprep.subr.bf16.mxu1 %v2089_v48  ;;  %v2141_v48 = vld [vmem:[#allocation13 + $0x18] sm:$0xff]  }
 0x483   :  { %1119 = vmatpush1.bf16.msra.mxu1 %v2087_v52  ;;  %v2143_v52 = vld [vmem:[#allocation13 + $0x50] sm:$0xff]  }
 0x484   :  { %1120 = vmatprep.subr.bf16.mxu1 %v2095_v57  ;;  %v2146_v57 = vld [vmem:[#allocation13 + $0x90] sm:$0xff]  }
 0x487   :  { %1121 = vmatpush1.bf16.msra.mxu1 %v2093_v56  ;;  %v2145_v56 = vld [vmem:[#allocation13 + $0x10] sm:$0xff]  }
 0x488   :  { %1122 = vmatprep.subr.bf16.mxu1 %v2101_v60  ;;  %v2149_v60 = vld [vmem:[#allocation13 + $0x8] sm:$0xff]  }
 0x48b   :  { %1123 = vmatpush1.bf16.msra.mxu1 %v2099_v62  ;;  %v2151_v62 = vld [vmem:[#allocation13 + $0x40] sm:$0xff]  }
 0x48c   :  { %1124 = vmatprep.subr.bf16.mxu1 %v2107_v2  ;;  %v2153_v2 = vld [vmem:[#allocation13] sm:$0xff]  }
 0x48f   :  { %1125 = vmatpush1.bf16.msra.mxu1 %v2105_v4  ;;  %v1731_v4 = vld [vmem:[%s2644_s8 + $0x4] ss:$8 sm:$0xf] }
 0x490   :  { %1126 = vmatprep.subr.bf16.mxu1 %v2113_v6  ;;  %v937_v6 = vrot.slane %v1731_v4, %v2515_v55 }
 0x493   :  { %1127 = vmatpush1.bf16.msra.mxu1 %v2111_v8  ;;  %v941_v8 = vrot.slane %v1731_v4, %v2507_v51 }
 0x494   :  { %1128 = vmatprep.subr.bf16.mxu1 %v2119_v11 }
 0x497   :  { %1129 = vmatpush1.bf16.msra.mxu1 %v2117_v13 }
 0x532   :  { %v713_v9 = vpop.f32.mrf.mxu1 }
 0x534   :  { %v1977_v16 = vpop.f32.mrf.mxu1 }
 0x536   :  { %v716_v17 = vpop.f32.mrf.mxu1 }
 0x538   :  { %v1978_v18 = vpop.f32.mrf.mxu1 }
 0x53a   :  { %v759_v19 = vpop.f32.mrf.mxu1 }
 0x53b   :  { %v781_v21 = vpack.c.bf16 %v759_v19, %v713_v9 }
 0x53c   :  { %v1983_v22 = vpop.f32.mrf.mxu1 }
 0x53d   :  { %2002 = vmatmul.mubr.bf16.vlgmr.msra.gmra.mxu0 %v781_v21 }
 0x53e   :  { %v762_v23 = vpop.f32.mrf.mxu1  ;;  %1189 = vmatprep.mubr.bf16.mxu0 %v2378_v0  ;;  %v2078_v0 = vld [vmem:[#allocation11 + $0xe8] ss:$16 sps:$4 sm:$0xff]  }
 0x53f   :  { %1158 = vmatpush1.bf16.msra.mxu0 %v2078_v0  ;;  %v129_v23 = vld [vmem:[%s2644_s8 + $0x2] ss:$0 sm:$0xff] }
 0x540   :  { %v1984_v24 = vpop.f32.mrf.mxu1  ;;  %1159 = vmatprep.subr.bf16.mxu0 %v2086_v43  ;;  %v2127_v0 = vld [vmem:[#allocation13 + $0x70] sm:$0xff]   ;;  %v2138_v43 = vld [vmem:[#allocation13 + $0xa0] sm:$0xff]  }
 0x543   :  { %1160 = vmatpush1.bf16.msra.mxu0 %v2084_v45  ;;  %v2140_v45 = vld [vmem:[#allocation13 + $0xd8] sm:$0xff]  }
 0x544   :  { %1161 = vmatprep.subr.bf16.mxu0 %v2092_v49  ;;  %v2142_v49 = vld [vmem:[#allocation13 + $0x98] sm:$0xff]  }
 0x547   :  { %1162 = vmatpush1.bf16.msra.mxu0 %v2090_v54  ;;  %v2144_v54 = vld [vmem:[#allocation13 + $0xd0] sm:$0xff]  }
 0x548   :  { %1163 = vmatprep.subr.bf16.mxu0 %v2098_v59  ;;  %v2148_v59 = vld [vmem:[#allocation13 + $0xc8] sm:$0xff]  }
 0x54b   :  { %1164 = vmatpush1.bf16.msra.mxu0 %v2096_v58  ;;  %v2147_v58 = vld [vmem:[#allocation13 + $0x48] sm:$0xff]  }
 0x54c   :  { %1165 = vmatprep.subr.bf16.mxu0 %v2104_v61  ;;  %v2150_v61 = vld [vmem:[#allocation13 + $0x88] sm:$0xff]  }
 0x54f   :  { %1166 = vmatpush1.bf16.msra.mxu0 %v2102_v63  ;;  %v2152_v63 = vld [vmem:[#allocation13 + $0xc0] sm:$0xff]  }
 0x550   :  { %1167 = vmatprep.subr.bf16.mxu0 %v2110_v3  ;;  %v2154_v3 = vld [vmem:[#allocation13 + $0x80] sm:$0xff]  }
 0x553   :  { %1168 = vmatpush1.bf16.msra.mxu0 %v2108_v5  ;;  %v948_v5 = vsub.s32 3, %v2504_v50 }
 0x554   :  { %1169 = vmatprep.subr.bf16.mxu0 %v2116_v7  ;;  %v945_v7 = vrot.slane %v1731_v4, %v304_v53 }
 0x557   :  { %1170 = vmatpush1.bf16.msra.mxu0 %v2114_v10  ;;  %v949_v10 = vrot.slane %v1731_v4, %v948_v5 }
 0x558   :  { %1171 = vmatprep.subr.bf16.mxu0 %v2122_v12 }
 0x55b   :  { %1172 = vmatpush1.bf16.msra.mxu0 %v2120_v14 }
 0x5fd   :  { %v864_v26 = vpop.f32.mrf.mxu0 }
 0x5fe   :  { %v865_v1 = vadd.f32 %v864_v26, %v128_v25 }
 0x5ff   :  { %v2003_v27 = vpop.f32.mrf.mxu0 }
 0x600   :  { %v871_v28 = vadd.f32 %v865_v1, %v2494_v46  ;;  %v130_v1 = vld [vmem:[%s2644_s8 + $0x3] ss:$0 sm:$0xff] }
 0x601   :  { %v867_v29 = vpop.f32.mrf.mxu0 }
 0x602   :  { %v868_v30 = vadd.f32 %v867_v29, %v128_v25  ;;  %873 = vadd.xlane.f32.xlu1 %v871_v28 }
 0x603   :  { %v2004_v31 = vpop.f32.mrf.mxu0 }
 0x604   :  { %v872_v32 = vadd.f32 %v868_v30, %v2496_v47  ;;  %v2123_v31 = vld [vmem:[#allocation13 + $0x78] sm:$0xff]  }
 0x605   :  { %1877 = vmatprep.subr.bf16.mxu1 %v2123_v31 }
 0x606   :  { %875 = vadd.xlane.f32.xlu1 %v872_v32 }
 0x68b   :  { %v874_v36 = vpop.xlane.xlu1 %873 }
 0x68c   :  { %v878_v37 = vmul.f32 0.0078125, %v874_v36  ;;  %v2129_v36 = vld [vmem:[#allocation13 + $0x30] sm:$0xff]  }
 0x68e   :  { %v2558_v38 = vsub.f32 %v871_v28, %v878_v37  ;;  %v2130_v37 = vld [vmem:[#allocation13 + $0xb0] sm:$0xff]  }
 0x68f   :  { %v876_v46 = vpop.xlane.xlu1 %875 }
 0x690   :  { %v879_v39 = vmul.f32 0.0078125, %v876_v46  ;;  %v882_v40 = vmul.f32 %v2558_v38, %v2558_v38  ;;  %v2132_v46 = vld [vmem:[#allocation13 + $0xe8] sm:$0xff]  }
 0x692   :  { %v2562_v41 = vsub.f32 %v872_v32, %v879_v39  ;;  %884 = vadd.xlane.f32.xlu1 %v882_v40  ;;  %v2124_v32 = vld [vmem:[#allocation13 + $0xf8] sm:$0xff]   ;;  %v2133_v39 = vld [vmem:[#allocation13 + $0x28] sm:$0xff]  }
 0x693   :  { %1899 = vmatprep.subr.bf16.mxu0 %v2124_v32  ;;  %v2134_v40 = vld [vmem:[#allocation13 + $0xa8] sm:$0xff]  }
 0x694   :  { %v883_v47 = vmul.f32 %v2562_v41, %v2562_v41 }
 0x696   :  { %886 = vadd.xlane.f32.xlu1 %v883_v47  ;;  %v2136_v47 = vld [vmem:[#allocation13 + $0xe0] sm:$0xff]  }
 0x71b   :  { %v885_v15 = vpop.xlane.xlu1 %884 }
 0x71c   :  { %v888_v9 = vmul.f32 0.0078125, %v885_v15 }
 0x71e   :  { %v890_v16 = vadd.f32 1e-12, %v888_v9 }
 0x71f   :  { %v887_v17 = vpop.xlane.xlu1 %886 }
 0x720   :  { %2163 = vrsqrt.f32 %v890_v16  ;;  %v889_v18 = vmul.f32 0.0078125, %v887_v17 }
 0x722   :  { %v891_v19 = vadd.f32 1e-12, %v889_v18 }
 0x724   :  { %2165 = vrsqrt.f32 %v891_v19 }
 0x72d   :  { %v2164_v21 = vpop.eup %2163 }
 0x72e   :  { %v894_v22 = vmul.f32 %v2164_v21, %v2558_v38  ;;  %v2131_v38 = vld [vmem:[#allocation13 + $0x68] sm:$0xff]  }
 0x730   :  { %v896_v26 = vmul.f32 %v894_v22, %v129_v23 }
 0x731   :  { %v2166_v24 = vpop.eup %2165 }
 0x732   :  { %v895_v25 = vmul.f32 %v2166_v24, %v2562_v41  ;;  %v2574_v28 = vadd.f32 %v896_v26, %v130_v1  ;;  %v2135_v41 = vld [vmem:[#allocation13 + $0x60] sm:$0xff]  }
 0x734   :  { %v897_v27 = vmul.f32 %v895_v25, %v129_v23 }
 0x736   :  { %v2576_v29 = vadd.f32 %v897_v27, %v130_v1 }
 0x738   :  { %v932_v30 = vpack.c.bf16 %v2576_v29, %v2574_v28 }
 0x73a   :  { %1147 = vmatmul.mubr.bf16.vlgmr.msra.gmra.mxu1 %v932_v30  ;;  %1190 = vmatmul.mubr.bf16.vlgmr.msra.gmra.mxu0 %v932_v30 }
 0x73b   :  { %1878 = vmatpush3.bf16.msra.mxu1 %v2125_v33  ;;  %1900 = vmatpush3.bf16.msra.mxu0 %v2126_v34 }
 0x73c   :  { %1879 = vmatprep.subr.bf16.mxu1 %v2127_v0  ;;  %1901 = vmatprep.subr.bf16.mxu0 %v2128_v35 }
 0x73f   :  { %1880 = vmatpush3.bf16.msra.mxu1 %v2129_v36  ;;  %1902 = vmatpush3.bf16.msra.mxu0 %v2130_v37 }
 0x740   :  { %1881 = vmatprep.subr.bf16.mxu1 %v2131_v38  ;;  %1903 = vmatprep.subr.bf16.mxu0 %v2132_v46 }
 0x743   :  { %1882 = vmatpush3.bf16.msra.mxu1 %v2133_v39  ;;  %1904 = vmatpush3.bf16.msra.mxu0 %v2134_v40 }
 0x744   :  { %1883 = vmatprep.subr.bf16.mxu1 %v2135_v41  ;;  %1905 = vmatprep.subr.bf16.mxu0 %v2136_v47 }
 0x747   :  { %1884 = vmatpush3.bf16.msra.mxu1 %v2137_v42  ;;  %1906 = vmatpush3.bf16.msra.mxu0 %v2138_v43 }
 0x748   :  { %1885 = vmatprep.subr.bf16.mxu1 %v2139_v44  ;;  %1907 = vmatprep.subr.bf16.mxu0 %v2140_v45 }
 0x74b   :  { %1886 = vmatpush3.bf16.msra.mxu1 %v2141_v48  ;;  %1908 = vmatpush3.bf16.msra.mxu0 %v2142_v49 }
 0x74c   :  { %1887 = vmatprep.subr.bf16.mxu1 %v2143_v52  ;;  %1909 = vmatprep.subr.bf16.mxu0 %v2144_v54 }
 0x74f   :  { %1888 = vmatpush3.bf16.msra.mxu1 %v2145_v56  ;;  %1910 = vmatpush3.bf16.msra.mxu0 %v2146_v57 }
 0x750   :  { %1889 = vmatprep.subr.bf16.mxu1 %v2147_v58  ;;  %1911 = vmatprep.subr.bf16.mxu0 %v2148_v59 }
 0x753   :  { %1890 = vmatpush3.bf16.msra.mxu1 %v2149_v60  ;;  %1912 = vmatpush3.bf16.msra.mxu0 %v2150_v61 }
 0x754   :  { %1891 = vmatprep.subr.bf16.mxu1 %v2151_v62  ;;  %1913 = vmatprep.subr.bf16.mxu0 %v2152_v63 }
 0x757   :  { %1892 = vmatpush3.bf16.msra.mxu1 %v2153_v2  ;;  %1914 = vmatpush3.bf16.msra.mxu0 %v2154_v3 }
 0x7fa   :  { %v1148_v11 = vpop.f32.mrf.mxu1  ;;  %v1191_v12 = vpop.f32.mrf.mxu0 }
 0x7fb   :  { %v2588_v13 = vadd.f32 %v1148_v11, %v937_v6  ;;  %v2590_v14 = vadd.f32 %v1191_v12, %v945_v7 }
 0x7fc   :  { %v1150_v15 = vpop.f32.mrf.mxu1  ;;  %v1193_v9 = vpop.f32.mrf.mxu0 }
 0x7fd   :  { %v1208_v16 = vmul.f32 0.044715, %v2588_v13  ;;  %v1210_v17 = vmul.f32 0.044715, %v2590_v14  ;;  %v1151_v18 = vadd.f32 %v1150_v15, %v941_v8  ;;  %v2594_v19 = vadd.f32 %v1193_v9, %v949_v10 }
 0x7fe   :  { %v1152_v50 = vpop.f32.mrf.mxu1  ;;  %v1195_v53 = vpop.f32.mrf.mxu0 }
 0x7ff   :  { %v1216_v21 = vmul.f32 %v1208_v16, %v2588_v13  ;;  %v1218_v22 = vmul.f32 %v1210_v17, %v2590_v14  ;;  %v1209_v23 = vmul.f32 0.044715, %v1151_v18  ;;  %v1211_v24 = vmul.f32 0.044715, %v2594_v19 }
 0x800   :  { %v1153_v25 = vadd.f32 %v1152_v50, %v937_v6  ;;  %v2599_v26 = vadd.f32 %v1195_v53, %v945_v7  ;;  %v1154_v1 = vpop.f32.mrf.mxu1  ;;  %v1197_v27 = vpop.f32.mrf.mxu0  ;;  %v1201_v9 = vmul.f32 0.5, %v1151_v18  ;;  %v1200_v17 = vmul.f32 0.5, %v2588_v13 }
 0x801   :  { %v1224_v30 = vmul.f32 %v1216_v21, %v2588_v13  ;;  %v1226_v31 = vmul.f32 %v1218_v22, %v2590_v14  ;;  %v1217_v32 = vmul.f32 %v1209_v23, %v1151_v18  ;;  %v1219_v33 = vmul.f32 %v1211_v24, %v2594_v19 }
 0x802   :  { %v1212_v34 = vmul.f32 0.044715, %v1153_v25  ;;  %v1214_v0 = vmul.f32 0.044715, %v2599_v26  ;;  %v1155_v35 = vadd.f32 %v1154_v1, %v941_v8  ;;  %v1198_v36 = vadd.f32 %v1197_v27, %v949_v10 }
 0x803   :  { %v1232_v37 = vadd.f32 %v1224_v30, %v2588_v13  ;;  %v1234_v38 = vadd.f32 %v1226_v31, %v2590_v14  ;;  %v1225_v46 = vmul.f32 %v1217_v32, %v1151_v18  ;;  %v1227_v39 = vmul.f32 %v1219_v33, %v2594_v19 }
 0x804   :  { %v1220_v40 = vmul.f32 %v1212_v34, %v1153_v25  ;;  %v1222_v41 = vmul.f32 %v1214_v0, %v2599_v26  ;;  %v1213_v47 = vmul.f32 0.044715, %v1155_v35  ;;  %v1215_v42 = vmul.f32 0.044715, %v1198_v36 }
 0x805   :  { %v1240_v43 = vmul.f32 0.7978846, %v1232_v37  ;;  %v1242_v44 = vmul.f32 0.7978846, %v1234_v38  ;;  %v1233_v45 = vadd.f32 %v1225_v46, %v1151_v18  ;;  %v1235_v57 = vadd.f32 %v1227_v39, %v2594_v19 }
 0x806   :  { %v1228_v48 = vmul.f32 %v1220_v40, %v1153_v25  ;;  %v1230_v49 = vmul.f32 %v1222_v41, %v2599_v26  ;;  %v1221_v52 = vmul.f32 %v1213_v47, %v1155_v35  ;;  %v1223_v54 = vmul.f32 %v1215_v42, %v1198_v36 }
 0x807   :  { %v1241_v56 = vmul.f32 0.7978846, %v1233_v45  ;;  %2167 = vtanh.f32 %v1240_v43  ;;  %v1243_v62 = vmul.f32 0.7978846, %v1235_v57  ;;  %v1204_v22 = vmul.f32 0.5, %v1153_v25 }
 0x808   :  { %v1236_v58 = vadd.f32 %v1228_v48, %v1153_v25  ;;  %v1238_v59 = vadd.f32 %v1230_v49, %v2599_v26  ;;  %v1229_v60 = vmul.f32 %v1221_v52, %v1155_v35  ;;  %2169 = vtanh.f32 %v1242_v44  ;;  %v133_v43 = vld [vmem:[%s2644_s8 + $0x5] ss:$0 sm:$0xff] }
 0x809   :  { %v1231_v61 = vmul.f32 %v1223_v54, %v1198_v36  ;;  %2171 = vtanh.f32 %v1241_v56  ;;  %v1205_v27 = vmul.f32 0.5, %v1155_v35  ;;  %v1206_v31 = vmul.f32 0.5, %v2599_v26 }
 0x80a   :  { %v1244_v63 = vmul.f32 0.7978846, %v1236_v58  ;;  %v1246_v2 = vmul.f32 0.7978846, %v1238_v59  ;;  %v1237_v3 = vadd.f32 %v1229_v60, %v1155_v35  ;;  %2173 = vtanh.f32 %v1243_v62 }
 0x80b   :  { %v1239_v4 = vadd.f32 %v1231_v61, %v1198_v36  ;;  %v1203_v33 = vmul.f32 0.5, %v2594_v19  ;;  %v1207_v34 = vmul.f32 0.5, %v1198_v36  ;;  %v1202_v13 = vmul.f32 0.5, %v2590_v14 }
 0x80c   :  { %2175 = vtanh.f32 %v1244_v63  ;;  %v1245_v5 = vmul.f32 0.7978846, %v1237_v3 }
 0x80d   :  { %2177 = vtanh.f32 %v1246_v2  ;;  %v1247_v6 = vmul.f32 0.7978846, %v1239_v4 }
 0x80e   :  { %2179 = vtanh.f32 %v1245_v5 }
 0x80f   :  { %2181 = vtanh.f32 %v1247_v6 }
 0x814   :  { %v2168_v7 = vpop.eup %2167 }
 0x815   :  { %v2170_v8 = vpop.eup %2169  ;;  %v1256_v23 = vadd.f32 1.0, %v2168_v7 }
 0x816   :  { %v2172_v10 = vpop.eup %2171  ;;  %v1258_v32 = vadd.f32 1.0, %v2170_v8 }
 0x817   :  { %v2174_v11 = vpop.eup %2173  ;;  %v1257_v16 = vadd.f32 1.0, %v2172_v10  ;;  %v1264_v40 = vmul.f32 %v1256_v23, %v1200_v17 }
 0x818   :  { %v1259_v21 = vadd.f32 1.0, %v2174_v11  ;;  %v1266_v47 = vmul.f32 %v1258_v32, %v1202_v13 }
 0x819   :  { %v2176_v12 = vpop.eup %2175  ;;  %v1265_v37 = vmul.f32 %v1257_v16, %v1201_v9 }
 0x81a   :  { %v2178_v15 = vpop.eup %2177  ;;  %v1260_v50 = vadd.f32 1.0, %v2176_v12  ;;  %v1267_v39 = vmul.f32 %v1259_v21, %v1203_v33  ;;  %v1645_v12 = vrot.slane %v2529_v20, %v2515_v55  ;;  %v134_v33 = vld [vmem:[%s2644_s8 + $0x6] ss:$0 sm:$0xff] }
 0x81b   :  { %v2180_v53 = vpop.eup %2179  ;;  %v1262_v24 = vadd.f32 1.0, %v2178_v15 }
 0x81c   :  { %v2182_v1 = vpop.eup %2181  ;;  %v1261_v30 = vadd.f32 1.0, %v2180_v53  ;;  %v1268_v18 = vmul.f32 %v1260_v50, %v1204_v22 }
 0x81d   :  { %v1263_v0 = vadd.f32 1.0, %v2182_v1  ;;  %v1270_v46 = vmul.f32 %v1262_v24, %v1206_v31 }
 0x81e   :  { %v1269_v38 = vmul.f32 %v1261_v30, %v1205_v27  ;;  %v1336_v42 = vpack.c.bf16 %v1268_v18, %v1264_v40  ;;  %v135_v18 = vld [vmem:[%s2644_s8 + $0x7] ss:$0 sm:$0xff]  ;;  %s2383_s8 = smov [#allocation14]  }
 0x81f   :  { %v1271_v25 = vmul.f32 %v1263_v0, %v1207_v34  ;;  %v1338_v26 = vpack.c.bf16 %v1270_v46, %v1266_v47  ;;  %s1719_s21 = sshll.u32 %s2383_s8, 4  ;;  %s1720_s21 = int_to_ptr.vmem [resolvable:$true] %s1719_s21 }
 0x820   :  { %v1337_v41 = vpack.c.bf16 %v1269_v38, %v1265_v37  ;;  %s2333_s22 = scalar_lea.vmem %s1720_s21, 32  ;;  %p2338_p8 = scmp.lt.s32.totalorder %s1720_s21, %s1720_s21 }
 0x821   :  { %v1339_v35 = vpack.c.bf16 %v1271_v25, %v1267_v39  ;;  %p2334_p7 = scmp.ne.s32.totalorder %s1720_s21, %s2333_s22  ;;  %p2339_p9 = scmp.lt.s32.totalorder %s2333_s22, %s2333_s22 }
 0x822   :  { %1564 = vmatprep.mubr.bf16.mxu1 %v1337_v41 }
 0x823   :  { %1605 = vmatprep.mubr.bf16.mxu0 %v1339_v35  ;;  %1565 = vmatmul.mubr.bf16.vlgmr.msra.gmra.mxu1 %v1336_v42  ;;  %p2340_p10 = por %p2339_p9, %p2338_p8 }
 0x824   :  { %1606 = vmatmul.mubr.bf16.vlgmr.msra.gmra.mxu0 %v1338_v26 }
 0x825   :  { %p2341_p11 = pnand %p2340_p10, %p2334_p7 }
 0x8e3   :  { %v1893_v19 = vpop.f32.mrf.mxu1 }
 0x8e4   :  { %v1915_v36 = vpop.f32.mrf.mxu0 }
 0x8e5   :  { %v1894_v14 = vpop.f32.mrf.mxu1 }
 0x8e6   :  { %v1895_v44 = vadd.f32 %v1894_v14, %v1893_v19  ;;  %v1916_v45 = vpop.f32.mrf.mxu0 }
 0x8e7   :  { %v1896_v48 = vpop.f32.mrf.mxu1  ;;  %v1917_v52 = vadd.f32 %v1916_v45, %v1915_v36 }
 0x8e8   :  { %v1567_v49 = vadd.f32 %v1895_v44, %v133_v43  ;;  %v1918_v54 = vpop.f32.mrf.mxu0 }
 0x8e9   :  { %v1897_v56 = vpop.f32.mrf.mxu1 }
 0x8ea   :  { %v1608_v57 = vadd.f32 %v1917_v52, %v1567_v49  ;;  %v1898_v58 = vadd.f32 %v1897_v56, %v1896_v48  ;;  %v1919_v59 = vpop.f32.mrf.mxu0 }
 0x8eb   :  { %v1920_v61 = vadd.f32 %v1919_v59, %v1918_v54 }
 0x8ec   :  { %v1570_v60 = vadd.f32 %v1898_v58, %v133_v43  ;;  %v1614_v62 = vadd.f32 %v1608_v57, %v2574_v28  ;;  %v1652_v28 = vrot.slane %v2529_v20, %v2507_v51 }
 0x8ee   :  { %v1611_v63 = vadd.f32 %v1920_v61, %v1570_v60  ;;  %1616 = vadd.xlane.f32.xlu1 %v1614_v62 }
 0x8f0   :  { %v1615_v2 = vadd.f32 %v1611_v63, %v2576_v29 }
 0x8f2   :  { %1618 = vadd.xlane.f32.xlu1 %v1615_v2 }
 0x977   :  { %v1617_v3 = vpop.xlane.xlu1 %1616 }
 0x978   :  { %v1620_v4 = vmul.f32 0.0078125, %v1617_v3 }
 0x97a   :  { %v1622_v5 = vsub.f32 %v1614_v62, %v1620_v4 }
 0x97b   :  { %v1619_v6 = vpop.xlane.xlu1 %1618 }
 0x97c   :  { %v1621_v7 = vmul.f32 0.0078125, %v1619_v6  ;;  %v1624_v8 = vmul.f32 %v1622_v5, %v1622_v5 }
 0x97e   :  { %v1623_v10 = vsub.f32 %v1615_v2, %v1621_v7  ;;  %1626 = vadd.xlane.f32.xlu1 %v1624_v8 }
 0x980   :  { %v1625_v11 = vmul.f32 %v1623_v10, %v1623_v10 }
 0x982   :  { %1628 = vadd.xlane.f32.xlu0 %v1625_v11 }
 0x98f   :  { %1647 = vbcast.lane.b32.xlu1 %v1645_v12, 256 }
 0x998   :  { %1654 = vbcast.lane.b32.xlu0 %v1652_v28, 256 }
 0xa07   :  { %v1627_v29 = vpop.xlane.xlu1 %1626 }
 0xa08   :  { %v1630_v15 = vmul.f32 0.0078125, %v1627_v29 }
 0xa0a   :  { %v1632_v9 = vadd.f32 1e-12, %v1630_v15 }
 0xa0b   :  { %v1629_v16 = vpop.xlane.xlu0 %1628  ;;  %v1648_v17 = vpop.permute.xlu1 %1647 }
 0xa0c   :  { %2183 = vrsqrt.f32 %v1632_v9  ;;  %v1631_v50 = vmul.f32 0.0078125, %v1629_v16  ;;  %v1670_v53 = vrot.slane %v1648_v17, 4 }
 0xa0e   :  { %v1633_v21 = vadd.f32 1e-12, %v1631_v50  ;;  %v1671_v22 = vadd.f32 %v1670_v53, %v1648_v17 }
 0xa0f   :  { %v1655_v23 = vpop.permute.xlu0 %1654 }
 0xa10   :  { %2185 = vrsqrt.f32 %v1633_v21  ;;  %v1676_v24 = vrot.slane %v1655_v23, 4  ;;  %v1672_v1 = vrot.slane %v1671_v22, 2 }
 0xa12   :  { %v1677_v55 = vadd.f32 %v1676_v24, %v1655_v23  ;;  %v1673_v27 = vadd.f32 %v1672_v1, %v1671_v22 }
 0xa14   :  { %v1678_v30 = vrot.slane %v1677_v55, 2  ;;  %v1674_v51 = vrot.slane %v1673_v27, 1 }
 0xa16   :  { %v1679_v31 = vadd.f32 %v1678_v30, %v1677_v55  ;;  %v1675_v0 = vadd.f32 %v1674_v51, %v1673_v27 }
 0xa18   :  { %v1680_v20 = vrot.slane %v1679_v31, 1  ;;  %v1682_v25 = vmax.f32 %v1675_v0, 1e-06 }
 0xa19   :  { %v2184_v32 = vpop.eup %2183 }
 0xa1a   :  { %v1636_v34 = vmul.f32 %v2184_v32, %v1622_v5  ;;  %v1681_v37 = vadd.f32 %v1680_v20, %v1679_v31  ;;  %2187 = vrcp.f32 %v1682_v25 }
 0xa1c   :  { %v1638_v38 = vmul.f32 %v1636_v34, %v134_v33  ;;  %v1683_v41 = vmax.f32 %v1681_v37, 1e-06 }
 0xa1d   :  { %v2186_v13 = vpop.eup %2185 }
 0xa1e   :  { %v1637_v46 = vmul.f32 %v2186_v13, %v1623_v10  ;;  %v1640_v39 = vadd.f32 %v1638_v38, %v135_v18  ;;  %2189 = vrcp.f32 %v1683_v41 }
 0xa20   :  { %v1639_v40 = vmul.f32 %v1637_v46, %v134_v33  ;;  %v1656_v47 = vmul.f32 %v1648_v17, %v1640_v39 }
 0xa22   :  { %v1641_v35 = vadd.f32 %v1639_v40, %v135_v18  ;;  %v1658_v42 = vrot.slane %v1656_v47, 4 }
 0xa24   :  { %v1657_v26 = vmul.f32 %v1655_v23, %v1641_v35  ;;  %v1659_v19 = vadd.f32 %v1658_v42, %v1656_v47 }
 0xa26   :  { %v1664_v36 = vrot.slane %v1657_v26, 4  ;;  %v1660_v43 = vrot.slane %v1659_v19, 2 }
 0xa27   :  { %v2188_v56 = vpop.eup %2187 }
 0xa28   :  { %v1665_v14 = vadd.f32 %v1664_v36, %v1657_v26  ;;  %v1661_v44 = vadd.f32 %v1660_v43, %v1659_v19 }
 0xa2a   :  { %v1666_v45 = vrot.slane %v1665_v14, 2  ;;  %v1662_v48 = vrot.slane %v1661_v44, 1 }
 0xa2b   :  { %v2190_v59 = vpop.eup %2189 }
 0xa2c   :  { %v1667_v49 = vadd.f32 %v1666_v45, %v1665_v14  ;;  %v1663_v52 = vadd.f32 %v1662_v48, %v1661_v44 }
 0xa2e   :  { %v1668_v54 = vrot.slane %v1667_v49, 1  ;;  %v1686_v58 = vmul.f32 %v2188_v56, %v1663_v52 }
 0xa30   :  { %v1669_v57 = vadd.f32 %v1668_v54, %v1667_v49  ;;  %v1688_v61 = vmul.f32 %v1686_v58, %v1686_v58 }
 0xa32   :  { %v1687_v60 = vmul.f32 %v2190_v59, %v1669_v57 }
 0xa34   :  { %v1689_v62 = vmul.f32 %v1687_v60, %v1687_v60 }
 0xa36   :  { %v1693_v63 = vsel %vm1692_vm6, %v1689_v62, %v1688_v61 }
 0xa37   :  { %v1696_v2 = vsel %vm1695_vm7, %v1693_v63, 0.0 }
 0xa38   :  { %1697 = vadd.xlane.f32.xlu1 %v1696_v2 }
 0xac1   :  { %v1698_v3 = vpop.xlane.xlu1 %1697 }
 0xac2   :  { %v1699_v4 = vmax.f32 %v1698_v3, 1e-24 }
 0xac4   :  { %2191 = vrsqrt.f32 %v1699_v4 }
 0xad1   :  { %v2192_v5 = vpop.eup %2191 }
 0xad2   :  { %v1702_v6 = vrot.slane %v2192_v5, 1  ;;  %v1705_v8 = vmul.f32 %v2192_v5, %v1686_v58 }
 0xad4   :  { %v1706_v7 = vmul.f32 %v1702_v6, %v1687_v60 }
 0xad6   :  { %v1709_v10 = vrot.slane %v1706_v7, 7 }
 0xad8   :  { %v1710_v11 = vsel %vm1692_vm6, %v1709_v10, %v1705_v8 }
 0xad9   :  { %1712 = vst [vmem:[#allocation14] sm:$0x3] %v1710_v11 }
 0xada   :  { %2344 = shalt.err (!%p2341_p11)
}
 0xadb   :  { %1722 = dma.vmem_to_hbm [thread:$0]  %s1720_s21, 32, %s2645_s9, [#allocation4]  }
 0xadc   :  { %2361 = dma.done.wait [#allocation4], 32  }
 0xadd   :  { %2362 = vsyncadd [#allocation4], 4294967264 }
 0xade   :  { %1726 = vsyncpa [#allocation3], 1 }
 0xadf   :  { %1727 = vsyncpa [#allocation6], 1 }
 0xae0   :  { %1728 = vsyncpa [#allocation9], 1 }
 0xae1   :  { %1729 = vsyncpa [#allocation12], 1 }
 0xae2   :  { %1730 = vsyncpa [#allocation4], 1 }

</bundles_post_ra>
